<compile_context>
chip_gen: v6e
topology: v6e:2x2x1
jax: 0.10.0
libtpu: 0.0.40
codegen_flags: <defaults>
</compile_context>

<pallas_src>
import math
import functools

import jax
import jax.numpy as jnp
from jax import lax
from jax.experimental import pallas as pl
from jax.experimental.pallas import tpu as pltpu


_VMEM_LIMIT_BYTES = 48 * 1024 * 1024   # headroom below v7x's 64 MiB physical VMEM


def _pick_tile(dim, pref, align):
    """Largest tile <= pref that is a multiple of `align` and divides `dim`.
    Falls back to the full dim (always a legal BlockSpec block size)."""
    if dim <= pref:
        return dim
    t = (pref // align) * align
    while t >= align:
        if dim % t == 0:
            return t
        t -= align
    return dim


# ----------------------------- Pallas kernels ------------------------------

def _linear_kernel(x_ref, w_ref, b_ref, o_ref, acc_ref, *, activation):
    @pl.when(pl.program_id(2) == 0)
    def _():
        acc_ref[...] = jnp.zeros_like(acc_ref)

    # bf16 MXU operands, f32 accumulation (weights are already stored bf16).
    acc_ref[...] += jnp.dot(
        x_ref[...].astype(jnp.bfloat16),
        w_ref[...].astype(jnp.bfloat16),
        preferred_element_type=jnp.float32)

    @pl.when(pl.program_id(2) == pl.num_programs(2) - 1)
    def _():
        y = acc_ref[...] + b_ref[...]
        if activation == "relu":
            y = jnp.maximum(y, 0.0)
        o_ref[...] = y.astype(o_ref.dtype)


def pallas_linear(x, w, b, activation=None):
    """x: (M, K) f32, w: (K, N) bf16/f32, b: (N,) f32 -> (M, N) f32.

    Tiled over (M, N, K) with a K-reduction accumulator in VMEM scratch.
    """
    M, K = x.shape
    N = w.shape[1]
    tm = _pick_tile(M, 256, 8)
    tn = _pick_tile(N, 256, 128)
    tk = _pick_tile(K, 512, 128)
    grid = (M // tm, N // tn, K // tk)
    kernel = functools.partial(_linear_kernel, activation=activation)
    return pl.pallas_call(
        kernel,
        out_shape=jax.ShapeDtypeStruct((M, N), jnp.float32),
        grid=grid,
        in_specs=[
            pl.BlockSpec((tm, tk), lambda i, j, k: (i, k)),
            pl.BlockSpec((tk, tn), lambda i, j, k: (k, j)),
            pl.BlockSpec((1, tn), lambda i, j, k: (0, j)),
        ],
        out_specs=pl.BlockSpec((tm, tn), lambda i, j, k: (i, j)),
        scratch_shapes=[pltpu.VMEM((tm, tn), jnp.float32)],
        compiler_params=pltpu.CompilerParams(
            dimension_semantics=("parallel", "parallel", "arbitrary"),
            vmem_limit_bytes=_VMEM_LIMIT_BYTES),
    )(x, w, b.reshape(1, N))


def _mha_kernel(q_ref, k_ref, v_ref, m_ref, o_ref, *, num_heads, inv_scale):
    """One batch element, all heads. Heads live along the lane (feature) axis."""
    q = q_ref[...] * jnp.float32(inv_scale)      # (Sq, D); fold 1/sqrt(dk) into Q
    k = k_ref[...]                               # (Sk, D)
    v = v_ref[...]                               # (Sk, D)
    masked = m_ref[...] == 0                     # (Sq, Sk) bool; True = masked out
    dk = q.shape[-1] // num_heads
    neg = jnp.float32(-1e9)

    outs = []
    for h in range(num_heads):                   # static unrolled loop over heads
        lo, hi = h * dk, (h + 1) * dk
        qh, kh, vh = q[:, lo:hi], k[:, lo:hi], v[:, lo:hi]
        # Q @ K^T without materializing a transpose: contract the dk dims.
        s = lax.dot_general(qh, kh, (((1,), (1,)), ((), ())),
                            preferred_element_type=jnp.float32)   # (Sq, Sk)
        s = jnp.where(masked, neg, s)
        s = s - jnp.max(s, axis=-1, keepdims=True)
        p = jnp.exp(s)
        p = p * pl.reciprocal(jnp.sum(p, axis=-1, keepdims=True), approx=True)
        oh = lax.dot_general(p, vh, (((1,), (0,)), ((), ())),
                             preferred_element_type=jnp.float32)  # (Sq, dk)
        outs.append(oh)

    # Single lane-dense store of the full (Sq, D) output block.
    o_ref[...] = jnp.concatenate(outs, axis=-1).astype(o_ref.dtype)


def pallas_mha_core(q, k, v, mask, num_heads, scale):
    """q: (B,Sq,D), k/v: (B,Sk,D), mask: (B,Sq,Sk) int32 -> (B,Sq,D).

    grid=(B,): one grid step per batch element; the mask is DMA'd once per
    batch (not once per head) and no head transposes touch HBM.
    """
    B, Sq, D = q.shape
    Sk = k.shape[1]
    kernel = functools.partial(_mha_kernel, num_heads=num_heads,
                               inv_scale=float(1.0 / scale))
    return pl.pallas_call(
        kernel,
        out_shape=jax.ShapeDtypeStruct((B, Sq, D), jnp.float32),
        grid=(B,),
        in_specs=[
            pl.BlockSpec((None, Sq, D), lambda b: (b, 0, 0)),
            pl.BlockSpec((None, Sk, D), lambda b: (b, 0, 0)),
            pl.BlockSpec((None, Sk, D), lambda b: (b, 0, 0)),
            pl.BlockSpec((None, Sq, Sk), lambda b: (b, 0, 0)),
        ],
        out_specs=pl.BlockSpec((None, Sq, D), lambda b: (b, 0, 0)),
        compiler_params=pltpu.CompilerParams(
            dimension_semantics=("parallel",),
            vmem_limit_bytes=_VMEM_LIMIT_BYTES),
    )(q, k, v, mask)


def _add_ln_kernel(x_ref, r_ref, g_ref, b_ref, o_ref, *, eps):
    y = x_ref[...] + r_ref[...]
    mean = jnp.mean(y, axis=-1, keepdims=True)
    c = y - mean
    var = jnp.mean(c * c, axis=-1, keepdims=True)
    o_ref[...] = (c * lax.rsqrt(var + eps) * g_ref[...] + b_ref[...]).astype(o_ref.dtype)


def pallas_add_layernorm(x, residual_add, gamma, beta, eps=1e-5):
    """LayerNorm(x + residual_add) over the last axis. x: (M, D); row tiled."""
    M, D = x.shape
    tm = _pick_tile(M, 512, 8)
    kernel = functools.partial(_add_ln_kernel, eps=eps)
    return pl.pallas_call(
        kernel,
        out_shape=jax.ShapeDtypeStruct((M, D), jnp.float32),
        grid=(M // tm,),
        in_specs=[
            pl.BlockSpec((tm, D), lambda i: (i, 0)),
            pl.BlockSpec((tm, D), lambda i: (i, 0)),
            pl.BlockSpec((1, D), lambda i: (0, 0)),
            pl.BlockSpec((1, D), lambda i: (0, 0)),
        ],
        out_specs=pl.BlockSpec((tm, D), lambda i: (i, 0)),
        compiler_params=pltpu.CompilerParams(
            dimension_semantics=("parallel",),
            vmem_limit_bytes=_VMEM_LIMIT_BYTES),
    )(x, residual_add, gamma.reshape(1, D), beta.reshape(1, D))


# ----------------------------- Model (JAX glue) -----------------------------

def self_attention(p, x, mask, num_heads):
    """Fused QKV projection -> batched (all heads) attention -> output proj."""
    B, S, D = x.shape
    dk = D // num_heads
    qkv = pallas_linear(x.reshape(B * S, D), p['wqkv'], p['bqkv'])   # (B*S, 3D)
    q = qkv[:, :D].reshape(B, S, D)
    k = qkv[:, D:2 * D].reshape(B, S, D)
    v = qkv[:, 2 * D:].reshape(B, S, D)
    o = pallas_mha_core(q, k, v, mask, num_heads, math.sqrt(dk))     # (B, S, D)
    out = pallas_linear(o.reshape(B * S, D), p['wo'], p['bo'])
    return out.reshape(B, S, D)


def cross_attention(p, query, kv, mask, num_heads):
    """Q from `query`, fused K/V from `kv` (encoder output)."""
    B, Sq, D = query.shape
    Sk = kv.shape[1]
    dk = D // num_heads
    q = pallas_linear(query.reshape(B * Sq, D), p['wqkv'][:, :D], p['bqkv'][:D])
    kvp = pallas_linear(kv.reshape(B * Sk, D), p['wqkv'][:, D:], p['bqkv'][D:])
    q = q.reshape(B, Sq, D)
    k = kvp[:, :D].reshape(B, Sk, D)
    v = kvp[:, D:].reshape(B, Sk, D)
    o = pallas_mha_core(q, k, v, mask, num_heads, math.sqrt(dk))     # (B, Sq, D)
    out = pallas_linear(o.reshape(B * Sq, D), p['wo'], p['bo'])
    return out.reshape(B, Sq, D)


def feed_forward(p, x):
    B, S, D = x.shape
    h = pallas_linear(x.reshape(B * S, D), p['w1'], p['b1'], activation="relu")
    out = pallas_linear(h, p['w2'], p['b2'])
    return out.reshape(B, S, D)


def encoder_layer(p, src, src_mask, num_heads):
    B, S, D = src.shape
    a = self_attention(p['self_attn'], src, src_mask, num_heads)
    src = pallas_add_layernorm(src.reshape(B * S, D), a.reshape(B * S, D),
                               p['norm1_g'], p['norm1_b']).reshape(B, S, D)
    f = feed_forward(p['ff'], src)
    src = pallas_add_layernorm(src.reshape(B * S, D), f.reshape(B * S, D),
                               p['norm2_g'], p['norm2_b']).reshape(B, S, D)
    return src


def decoder_layer(p, tgt, enc_output, tgt_mask, enc_mask, num_heads):
    B, T, D = tgt.shape
    a = self_attention(p['self_attn'], tgt, tgt_mask, num_heads)
    tgt = pallas_add_layernorm(tgt.reshape(B * T, D), a.reshape(B * T, D),
                               p['norm1_g'], p['norm1_b']).reshape(B, T, D)
    c = cross_attention(p['enc_attn'], tgt, enc_output, enc_mask, num_heads)
    tgt = pallas_add_layernorm(tgt.reshape(B * T, D), c.reshape(B * T, D),
                               p['norm2_g'], p['norm2_b']).reshape(B, T, D)
    f = feed_forward(p['ff'], tgt)
    tgt = pallas_add_layernorm(tgt.reshape(B * T, D), f.reshape(B * T, D),
                               p['norm3_g'], p['norm3_b']).reshape(B, T, D)
    return tgt


def transformer_forward(params, src, tgt, num_heads):
    d_model = params['src_emb'].shape[1]
    B, Ss = src.shape
    _, St = tgt.shape

    # Masks (int32; 0 = masked out). Fetched once per batch inside the kernel.
    src_valid = (src != 0).astype(jnp.int32)                     # (B, Ss)
    src_mask_enc = jnp.broadcast_to(src_valid[:, None, :], (B, Ss, Ss))
    src_mask_dec = jnp.broadcast_to(src_valid[:, None, :], (B, St, Ss))
    tgt_valid = (tgt != 0).astype(jnp.int32)                     # (B, St)
    tril = jnp.tril(jnp.ones((St, St), jnp.int32))
    tgt_mask = tgt_valid[:, None, :] * tril[None, :, :]          # (B, St, St)

    # Embedding + positional encoding (XLA glue: gather has no simple Pallas form).
    pe = params['pe']
    src_emb = jnp.take(params['src_emb'], src, axis=0) * math.sqrt(d_model) + pe[None, :Ss, :]
    tgt_emb = jnp.take(params['tgt_emb'], tgt, axis=0) * math.sqrt(d_model) + pe[None, :St, :]

    enc = src_emb
    for lp in params['enc_layers']:
        enc = encoder_layer(lp, enc, src_mask_enc, num_heads)

    dec = tgt_emb
    for lp in params['dec_layers']:
        dec = decoder_layer(lp, dec, enc, tgt_mask, src_mask_dec, num_heads)

    out = pallas_linear(dec.reshape(B * St, d_model), params['out_w'], params['out_b'])
    return out.reshape(B, St, -1)


# ----------------------------- Parameter init -------------------------------

def _init_linear(key, din, dout, scale=0.05):
    # Weights stored bf16 (MXU operands); biases stay f32.
    w = (jax.random.normal(key, (din, dout), jnp.float32) * scale).astype(jnp.bfloat16)
    return w, jnp.zeros((dout,), jnp.float32)


def _init_mha(key, d_model):
    ks = jax.random.split(key, 2)
    wqkv, bqkv = _init_linear(ks[0], d_model, 3 * d_model)   # fused Q/K/V projection
    wo, bo = _init_linear(ks[1], d_model, d_model)
    return {'wqkv': wqkv, 'bqkv': bqkv, 'wo': wo, 'bo': bo}


def _init_ff(key, d_model, d_ff):
    ks = jax.random.split(key, 2)
    w1, b1 = _init_linear(ks[0], d_model, d_ff)
    w2, b2 = _init_linear(ks[1], d_ff, d_model)
    return {'w1': w1, 'b1': b1, 'w2': w2, 'b2': b2}


def _init_encoder_layer(key, d_model, d_ff):
    ks = jax.random.split(key, 2)
    return {
        'self_attn': _init_mha(ks[0], d_model),
        'ff': _init_ff(ks[1], d_model, d_ff),
        'norm1_g': jnp.ones((d_model,), jnp.float32),
        'norm1_b': jnp.zeros((d_model,), jnp.float32),
        'norm2_g': jnp.ones((d_model,), jnp.float32),
        'norm2_b': jnp.zeros((d_model,), jnp.float32),
    }


def _init_decoder_layer(key, d_model, d_ff):
    ks = jax.random.split(key, 3)
    return {
        'self_attn': _init_mha(ks[0], d_model),
        'enc_attn': _init_mha(ks[1], d_model),
        'ff': _init_ff(ks[2], d_model, d_ff),
        'norm1_g': jnp.ones((d_model,), jnp.float32),
        'norm1_b': jnp.zeros((d_model,), jnp.float32),
        'norm2_g': jnp.ones((d_model,), jnp.float32),
        'norm2_b': jnp.zeros((d_model,), jnp.float32),
        'norm3_g': jnp.ones((d_model,), jnp.float32),
        'norm3_b': jnp.zeros((d_model,), jnp.float32),
    }


def _positional_encoding(max_len, d_model):
    position = jnp.arange(max_len, dtype=jnp.float32)[:, None]
    div_term = jnp.exp(jnp.arange(0, d_model, 2, dtype=jnp.float32)
                       * (-math.log(10000.0) / d_model))
    pe = jnp.zeros((max_len, d_model), jnp.float32)
    pe = pe.at[:, 0::2].set(jnp.sin(position * div_term))
    pe = pe.at[:, 1::2].set(jnp.cos(position * div_term))
    return pe


def init_transformer_params(key, src_vocab, tgt_vocab, d_model, num_layers,
                            d_ff, max_len):
    keys = jax.random.split(key, 3 + 2 * num_layers)
    params = {
        'src_emb': jax.random.normal(keys[0], (src_vocab, d_model), jnp.float32) * 0.05,
        'tgt_emb': jax.random.normal(keys[1], (tgt_vocab, d_model), jnp.float32) * 0.05,
        'pe': _positional_encoding(max_len, d_model),
        'enc_layers': [_init_encoder_layer(keys[3 + i], d_model, d_ff)
                       for i in range(num_layers)],
        'dec_layers': [_init_decoder_layer(keys[3 + num_layers + i], d_model, d_ff)
                       for i in range(num_layers)],
    }
    out_w, out_b = _init_linear(keys[2], d_model, tgt_vocab)
    params['out_w'] = out_w
    params['out_b'] = out_b
    return params


# ----------------------------------- main -----------------------------------

if __name__ == "__main__":
    # Small but lane/sublane-aligned shapes (d_model, d_ff, vocab multiples of 128;
    # sequence lengths multiples of 8) so every kernel boundary is (8,128)-friendly.
    src_vocab = 128
    tgt_vocab = 128
    d_model = 128
    num_layers = 2
    num_heads = 4
    d_ff = 256
    max_len = 64

    batch = 2
    src_len = 16
    tgt_len = 16

    root = jax.random.PRNGKey(0)
    k_params, k_src, k_tgt = jax.random.split(root, 3)
    params = init_transformer_params(k_params, src_vocab, tgt_vocab, d_model,
                                     num_layers, d_ff, max_len)

    # Token ids; force some zeros so padding masks are exercised.
    src = jax.random.randint(k_src, (batch, src_len), 1, src_vocab, dtype=jnp.int32)
    tgt = jax.random.randint(k_tgt, (batch, tgt_len), 1, tgt_vocab, dtype=jnp.int32)
    src = src.at[:, -2:].set(0)
    tgt = tgt.at[:, -2:].set(0)

    fwd = jax.jit(transformer_forward, static_argnums=(3,))
    out = fwd(params, src, tgt, num_heads)
    out = jax.block_until_ready(out)

    assert out.shape == (batch, tgt_len, tgt_vocab), out.shape
    assert bool(jnp.all(jnp.isfinite(out)))
    print("KERNEL_OK")
</pallas_src>

<mosaic_0001>
module attributes {stable_mosaic.version = 11 : i64} {
  func.func @_linear_kernel(%arg0: i32, %arg1: i32, %arg2: i32, %arg3: memref<32x128xf32, #tpu.memory_space<vmem>>, %arg4: memref<128x128xbf16, #tpu.memory_space<vmem>>, %arg5: memref<1x128xf32, #tpu.memory_space<vmem>>, %arg6: memref<32x128xf32, #tpu.memory_space<vmem>>, %arg7: memref<32x128xf32, #tpu.memory_space<vmem>>) attributes {dimension_semantics = [#tpu.dimension_semantics<parallel>, #tpu.dimension_semantics<parallel>, #tpu.dimension_semantics<arbitrary>], iteration_bounds = array<i64: 1, 3, 1>, scalar_prefetch = 0 : i64, scratch_operands = 1 : i64, tpu.core_type = #tpu.core_type<tc>, window_params = [{transform_indices = @transform_0, window_bounds = array<i64: 32, 128>}, {transform_indices = @transform_1, window_bounds = array<i64: 128, 128>}, {transform_indices = @transform_2, window_bounds = array<i64: 1, 128>}, {transform_indices = @transform_3, window_bounds = array<i64: 32, 128>}]} {
    %c0_i32 = arith.constant 0 : i32
    %0 = arith.cmpi eq, %arg2, %c0_i32 : i32
    %1 = arith.extui %0 : i1 to i32
    %c0_i32_0 = arith.constant 0 : i32
    %2 = arith.cmpi ne, %1, %c0_i32_0 : i32
    scf.if %2 {
      %cst_10 = arith.constant 0.000000e+00 : f32
      %13 = vector.broadcast %cst_10 : f32 to vector<32x128xf32>
      %c0_11 = arith.constant 0 : index
      %c0_12 = arith.constant 0 : index
      %14 = vector.load %arg7[%c0_11, %c0_12] : memref<32x128xf32, #tpu.memory_space<vmem>>, vector<32x128xf32>
      tpu.vector_store %arg7[%c0_11, %c0_12], %13 {strides = array<i32>} : memref<32x128xf32, #tpu.memory_space<vmem>>, vector<32x128xf32>,
    } else {
    }
    %c0 = arith.constant 0 : index
    %c0_1 = arith.constant 0 : index
    %3 = vector.load %arg7[%c0, %c0_1] : memref<32x128xf32, #tpu.memory_space<vmem>>, vector<32x128xf32>
    %c0_2 = arith.constant 0 : index
    %c0_3 = arith.constant 0 : index
    %4 = vector.load %arg3[%c0_2, %c0_3] : memref<32x128xf32, #tpu.memory_space<vmem>>, vector<32x128xf32>
    %5 = arith.truncf %4 : vector<32x128xf32> to vector<32x128xbf16>
    %c0_4 = arith.constant 0 : index
    %c0_5 = arith.constant 0 : index
    %6 = vector.load %arg4[%c0_4, %c0_5] : memref<128x128xbf16, #tpu.memory_space<vmem>>, vector<128x128xbf16>
    %cst = arith.constant dense<0.000000e+00> : vector<32x128xf32>
    %7 = tpu.matmul %5, %6, %cst {dimension_numbers = #tpu.dot_dimension_numbers<[1], [0], [0], [1], [0, 0, 1, 1], [], []>} : vector<32x128xbf16>, vector<128x128xbf16>, vector<32x128xf32> -> vector<32x128xf32>
    %8 = arith.addf %3, %7 : vector<32x128xf32>
    %c0_6 = arith.constant 0 : index
    %c0_7 = arith.constant 0 : index
    %9 = vector.load %arg7[%c0_6, %c0_7] : memref<32x128xf32, #tpu.memory_space<vmem>>, vector<32x128xf32>
    tpu.vector_store %arg7[%c0_6, %c0_7], %8 {strides = array<i32>} : memref<32x128xf32, #tpu.memory_space<vmem>>, vector<32x128xf32>,
    %c0_i32_8 = arith.constant 0 : i32
    %10 = arith.cmpi eq, %arg2, %c0_i32_8 : i32
    %11 = arith.extui %10 : i1 to i32
    %c0_i32_9 = arith.constant 0 : i32
    %12 = arith.cmpi ne, %11, %c0_i32_9 : i32
    scf.if %12 {
      %c0_10 = arith.constant 0 : index
      %c0_11 = arith.constant 0 : index
      %13 = vector.load %arg7[%c0_10, %c0_11] : memref<32x128xf32, #tpu.memory_space<vmem>>, vector<32x128xf32>
      %c0_12 = arith.constant 0 : index
      %c0_13 = arith.constant 0 : index
      %14 = vector.load %arg5[%c0_12, %c0_13] : memref<1x128xf32, #tpu.memory_space<vmem>>, vector<1x128xf32>
      %15 = vector.broadcast %14 : vector<1x128xf32> to vector<32x128xf32>
      %16 = arith.addf %13, %15 : vector<32x128xf32>
      %c0_14 = arith.constant 0 : index
      %c0_15 = arith.constant 0 : index
      %17 = vector.load %arg6[%c0_14, %c0_15] : memref<32x128xf32, #tpu.memory_space<vmem>>, vector<32x128xf32>
      tpu.vector_store %arg6[%c0_14, %c0_15], %16 {strides = array<i32>} : memref<32x128xf32, #tpu.memory_space<vmem>>, vector<32x128xf32>,
    } else {
    }
    return
  }
  func.func @transform_0(%arg0: i32, %arg1: i32, %arg2: i32) -> (i32, i32) {
    %c0_i32 = arith.constant 0 : i32
    return %arg0, %arg2 : i32, i32
  }
  func.func @transform_1(%arg0: i32, %arg1: i32, %arg2: i32) -> (i32, i32) {
    %c0_i32 = arith.constant 0 : i32
    return %arg2, %arg1 : i32, i32
  }
  func.func @transform_2(%arg0: i32, %arg1: i32, %arg2: i32) -> (i32, i32) {
    %c0_i32 = arith.constant 0 : i32
    %c0_i32_0 = arith.constant 0 : i32
    return %c0_i32, %arg1 : i32, i32
  }
  func.func @transform_3(%arg0: i32, %arg1: i32, %arg2: i32) -> (i32, i32) {
    %c0_i32 = arith.constant 0 : i32
    return %arg0, %arg1 : i32, i32
  }
}

module attributes {stable_mosaic.version = 11 : i64} {
  func.func @_mha_kernel(%arg0: i32, %arg1: memref<1x16x128xf32, #tpu.memory_space<vmem>>, %arg2: memref<1x16x128xf32, #tpu.memory_space<vmem>>, %arg3: memref<1x16x128xf32, #tpu.memory_space<vmem>>, %arg4: memref<1x16x16xi32, #tpu.memory_space<vmem>>, %arg5: memref<1x16x128xf32, #tpu.memory_space<vmem>>) attributes {dimension_semantics = [#tpu.dimension_semantics<parallel>], iteration_bounds = array<i64: 2>, scalar_prefetch = 0 : i64, scratch_operands = 0 : i64, tpu.core_type = #tpu.core_type<tc>, window_params = [{transform_indices = @transform_0, window_bounds = array<i64: 1, 16, 128>}, {transform_indices = @transform_1, window_bounds = array<i64: 1, 16, 128>}, {transform_indices = @transform_2, window_bounds = array<i64: 1, 16, 128>}, {transform_indices = @transform_3, window_bounds = array<i64: 1, 16, 16>}, {transform_indices = @transform_4, window_bounds = array<i64: 1, 16, 128>}]} {
    %c0 = arith.constant 0 : index
    %c0_0 = arith.constant 0 : index
    %c0_1 = arith.constant 0 : index
    %0 = vector.load %arg1[%c0, %c0_0, %c0_1] : memref<1x16x128xf32, #tpu.memory_space<vmem>>, vector<1x16x128xf32>
    %1 = vector.shape_cast %0 : vector<1x16x128xf32> to vector<16x128xf32>
    %cst = arith.constant 0.176776692 : f32
    %2 = vector.broadcast %cst : f32 to vector<16x128xf32>
    %3 = arith.mulf %1, %2 : vector<16x128xf32>
    %c0_2 = arith.constant 0 : index
    %c0_3 = arith.constant 0 : index
    %c0_4 = arith.constant 0 : index
    %4 = vector.load %arg2[%c0_2, %c0_3, %c0_4] : memref<1x16x128xf32, #tpu.memory_space<vmem>>, vector<1x16x128xf32>
    %5 = vector.shape_cast %4 : vector<1x16x128xf32> to vector<16x128xf32>
    %c0_5 = arith.constant 0 : index
    %c0_6 = arith.constant 0 : index
    %c0_7 = arith.constant 0 : index
    %6 = vector.load %arg3[%c0_5, %c0_6, %c0_7] : memref<1x16x128xf32, #tpu.memory_space<vmem>>, vector<1x16x128xf32>
    %7 = vector.shape_cast %6 : vector<1x16x128xf32> to vector<16x128xf32>
    %c0_8 = arith.constant 0 : index
    %c0_9 = arith.constant 0 : index
    %c0_10 = arith.constant 0 : index
    %8 = vector.load %arg4[%c0_8, %c0_9, %c0_10] : memref<1x16x16xi32, #tpu.memory_space<vmem>>, vector<1x16x16xi32>
    %9 = vector.shape_cast %8 : vector<1x16x16xi32> to vector<16x16xi32>
    %c0_i32 = arith.constant 0 : i32
    %10 = vector.broadcast %c0_i32 : i32 to vector<16x16xi32>
    %11 = arith.cmpi eq, %9, %10 : vector<16x16xi32>
    %12 = vector.extract_strided_slice %3 {offsets = [0, 0], sizes = [16, 32], strides = [1, 1]} : vector<16x128xf32> to vector<16x32xf32>
    %13 = vector.extract_strided_slice %5 {offsets = [0, 0], sizes = [16, 32], strides = [1, 1]} : vector<16x128xf32> to vector<16x32xf32>
    %14 = vector.extract_strided_slice %7 {offsets = [0, 0], sizes = [16, 32], strides = [1, 1]} : vector<16x128xf32> to vector<16x32xf32>
    %cst_11 = arith.constant dense<0.000000e+00> : vector<16x16xf32>
    %15 = tpu.matmul %12, %13, %cst_11 {dimension_numbers = #tpu.dot_dimension_numbers<[1], [1], [0], [0], [0, 0, 1, 0], [], []>} : vector<16x32xf32>, vector<16x32xf32>, vector<16x16xf32> -> vector<16x16xf32>
    %cst_12 = arith.constant -1.000000e+09 : f32
    %16 = vector.broadcast %cst_12 : f32 to vector<16x16xf32>
    %17 = arith.select %11, %16, %15 : vector<16x16xi1>, vector<16x16xf32>
    %cst_13 = arith.constant dense<0xFF800000> : vector<16xf32>
    %18 = vector.multi_reduction <maximumf>, %17, %cst_13 [1] : vector<16x16xf32> to vector<16xf32>
    %19 = vector.shape_cast %18 : vector<16xf32> to vector<16x1xf32>
    %20 = vector.broadcast %19 : vector<16x1xf32> to vector<16x16xf32>
    %21 = arith.subf %17, %20 : vector<16x16xf32>
    %22 = math.exp %21 : vector<16x16xf32>
    %cst_14 = arith.constant dense<0.000000e+00> : vector<16xf32>
    %23 = vector.multi_reduction <add>, %22, %cst_14 [1] : vector<16x16xf32> to vector<16xf32>
    %24 = vector.shape_cast %23 : vector<16xf32> to vector<16x1xf32>
    %25 = tpu.reciprocal %24 {approx = true} : vector<16x1xf32> -> vector<16x1xf32>
    %26 = vector.broadcast %25 : vector<16x1xf32> to vector<16x16xf32>
    %27 = arith.mulf %22, %26 : vector<16x16xf32>
    %cst_15 = arith.constant dense<0.000000e+00> : vector<16x32xf32>
    %28 = tpu.matmul %27, %14, %cst_15 {dimension_numbers = #tpu.dot_dimension_numbers<[1], [0], [0], [1], [0, 0, 1, 1], [], []>} : vector<16x16xf32>, vector<16x32xf32>, vector<16x32xf32> -> vector<16x32xf32>
    %29 = vector.extract_strided_slice %3 {offsets = [0, 32], sizes = [16, 32], strides = [1, 1]} : vector<16x128xf32> to vector<16x32xf32>
    %30 = vector.extract_strided_slice %5 {offsets = [0, 32], sizes = [16, 32], strides = [1, 1]} : vector<16x128xf32> to vector<16x32xf32>
    %31 = vector.extract_strided_slice %7 {offsets = [0, 32], sizes = [16, 32], strides = [1, 1]} : vector<16x128xf32> to vector<16x32xf32>
    %cst_16 = arith.constant dense<0.000000e+00> : vector<16x16xf32>
    %32 = tpu.matmul %29, %30, %cst_16 {dimension_numbers = #tpu.dot_dimension_numbers<[1], [1], [0], [0], [0, 0, 1, 0], [], []>} : vector<16x32xf32>, vector<16x32xf32>, vector<16x16xf32> -> vector<16x16xf32>
    %cst_17 = arith.constant -1.000000e+09 : f32
    %33 = vector.broadcast %cst_17 : f32 to vector<16x16xf32>
    %34 = arith.select %11, %33, %32 : vector<16x16xi1>, vector<16x16xf32>
    %cst_18 = arith.constant dense<0xFF800000> : vector<16xf32>
    %35 = vector.multi_reduction <maximumf>, %34, %cst_18 [1] : vector<16x16xf32> to vector<16xf32>
    %36 = vector.shape_cast %35 : vector<16xf32> to vector<16x1xf32>
    %37 = vector.broadcast %36 : vector<16x1xf32> to vector<16x16xf32>
    %38 = arith.subf %34, %37 : vector<16x16xf32>
    %39 = math.exp %38 : vector<16x16xf32>
    %cst_19 = arith.constant dense<0.000000e+00> : vector<16xf32>
    %40 = vector.multi_reduction <add>, %39, %cst_19 [1] : vector<16x16xf32> to vector<16xf32>
    %41 = vector.shape_cast %40 : vector<16xf32> to vector<16x1xf32>
    %42 = tpu.reciprocal %41 {approx = true} : vector<16x1xf32> -> vector<16x1xf32>
    %43 = vector.broadcast %42 : vector<16x1xf32> to vector<16x16xf32>
    %44 = arith.mulf %39, %43 : vector<16x16xf32>
    %cst_20 = arith.constant dense<0.000000e+00> : vector<16x32xf32>
    %45 = tpu.matmul %44, %31, %cst_20 {dimension_numbers = #tpu.dot_dimension_numbers<[1], [0], [0], [1], [0, 0, 1, 1], [], []>} : vector<16x16xf32>, vector<16x32xf32>, vector<16x32xf32> -> vector<16x32xf32>
    %46 = vector.extract_strided_slice %3 {offsets = [0, 64], sizes = [16, 32], strides = [1, 1]} : vector<16x128xf32> to vector<16x32xf32>
    %47 = vector.extract_strided_slice %5 {offsets = [0, 64], sizes = [16, 32], strides = [1, 1]} : vector<16x128xf32> to vector<16x32xf32>
    %48 = vector.extract_strided_slice %7 {offsets = [0, 64], sizes = [16, 32], strides = [1, 1]} : vector<16x128xf32> to vector<16x32xf32>
    %cst_21 = arith.constant dense<0.000000e+00> : vector<16x16xf32>
    %49 = tpu.matmul %46, %47, %cst_21 {dimension_numbers = #tpu.dot_dimension_numbers<[1], [1], [0], [0], [0, 0, 1, 0], [], []>} : vector<16x32xf32>, vector<16x32xf32>, vector<16x16xf32> -> vector<16x16xf32>
    %cst_22 = arith.constant -1.000000e+09 : f32
    %50 = vector.broadcast %cst_22 : f32 to vector<16x16xf32>
    %51 = arith.select %11, %50, %49 : vector<16x16xi1>, vector<16x16xf32>
    %cst_23 = arith.constant dense<0xFF800000> : vector<16xf32>
    %52 = vector.multi_reduction <maximumf>, %51, %cst_23 [1] : vector<16x16xf32> to vector<16xf32>
    %53 = vector.shape_cast %52 : vector<16xf32> to vector<16x1xf32>
    %54 = vector.broadcast %53 : vector<16x1xf32> to vector<16x16xf32>
    %55 = arith.subf %51, %54 : vector<16x16xf32>
    %56 = math.exp %55 : vector<16x16xf32>
    %cst_24 = arith.constant dense<0.000000e+00> : vector<16xf32>
    %57 = vector.multi_reduction <add>, %56, %cst_24 [1] : vector<16x16xf32> to vector<16xf32>
    %58 = vector.shape_cast %57 : vector<16xf32> to vector<16x1xf32>
    %59 = tpu.reciprocal %58 {approx = true} : vector<16x1xf32> -> vector<16x1xf32>
    %60 = vector.broadcast %59 : vector<16x1xf32> to vector<16x16xf32>
    %61 = arith.mulf %56, %60 : vector<16x16xf32>
    %cst_25 = arith.constant dense<0.000000e+00> : vector<16x32xf32>
    %62 = tpu.matmul %61, %48, %cst_25 {dimension_numbers = #tpu.dot_dimension_numbers<[1], [0], [0], [1], [0, 0, 1, 1], [], []>} : vector<16x16xf32>, vector<16x32xf32>, vector<16x32xf32> -> vector<16x32xf32>
    %63 = vector.extract_strided_slice %3 {offsets = [0, 96], sizes = [16, 32], strides = [1, 1]} : vector<16x128xf32> to vector<16x32xf32>
    %64 = vector.extract_strided_slice %5 {offsets = [0, 96], sizes = [16, 32], strides = [1, 1]} : vector<16x128xf32> to vector<16x32xf32>
    %65 = vector.extract_strided_slice %7 {offsets = [0, 96], sizes = [16, 32], strides = [1, 1]} : vector<16x128xf32> to vector<16x32xf32>
    %cst_26 = arith.constant dense<0.000000e+00> : vector<16x16xf32>
    %66 = tpu.matmul %63, %64, %cst_26 {dimension_numbers = #tpu.dot_dimension_numbers<[1], [1], [0], [0], [0, 0, 1, 0], [], []>} : vector<16x32xf32>, vector<16x32xf32>, vector<16x16xf32> -> vector<16x16xf32>
    %cst_27 = arith.constant -1.000000e+09 : f32
    %67 = vector.broadcast %cst_27 : f32 to vector<16x16xf32>
    %68 = arith.select %11, %67, %66 : vector<16x16xi1>, vector<16x16xf32>
    %cst_28 = arith.constant dense<0xFF800000> : vector<16xf32>
    %69 = vector.multi_reduction <maximumf>, %68, %cst_28 [1] : vector<16x16xf32> to vector<16xf32>
    %70 = vector.shape_cast %69 : vector<16xf32> to vector<16x1xf32>
    %71 = vector.broadcast %70 : vector<16x1xf32> to vector<16x16xf32>
    %72 = arith.subf %68, %71 : vector<16x16xf32>
    %73 = math.exp %72 : vector<16x16xf32>
    %cst_29 = arith.constant dense<0.000000e+00> : vector<16xf32>
    %74 = vector.multi_reduction <add>, %73, %cst_29 [1] : vector<16x16xf32> to vector<16xf32>
    %75 = vector.shape_cast %74 : vector<16xf32> to vector<16x1xf32>
    %76 = tpu.reciprocal %75 {approx = true} : vector<16x1xf32> -> vector<16x1xf32>
    %77 = vector.broadcast %76 : vector<16x1xf32> to vector<16x16xf32>
    %78 = arith.mulf %73, %77 : vector<16x16xf32>
    %cst_30 = arith.constant dense<0.000000e+00> : vector<16x32xf32>
    %79 = tpu.matmul %78, %65, %cst_30 {dimension_numbers = #tpu.dot_dimension_numbers<[1], [0], [0], [1], [0, 0, 1, 1], [], []>} : vector<16x16xf32>, vector<16x32xf32>, vector<16x32xf32> -> vector<16x32xf32>
    %80 = tpu.concatenate %28, %45, %62, %79 in 1 : vector<16x32xf32>, vector<16x32xf32>, vector<16x32xf32>, vector<16x32xf32> -> vector<16x128xf32>
    %c0_31 = arith.constant 0 : index
    %c0_32 = arith.constant 0 : index
    %c0_33 = arith.constant 0 : index
    %81 = vector.load %arg5[%c0_31, %c0_32, %c0_33] : memref<1x16x128xf32, #tpu.memory_space<vmem>>, vector<1x16x128xf32>
    %82 = vector.shape_cast %81 : vector<1x16x128xf32> to vector<16x128xf32>
    %83 = vector.shape_cast %80 : vector<16x128xf32> to vector<1x16x128xf32>
    tpu.vector_store %arg5[%c0_31, %c0_32, %c0_33], %83 {strides = array<i32>} : memref<1x16x128xf32, #tpu.memory_space<vmem>>, vector<1x16x128xf32>,
    return
  }
  func.func @transform_0(%arg0: i32) -> (i32, i32, i32) {
    %c0_i32 = arith.constant 0 : i32
    %c0_i32_0 = arith.constant 0 : i32
    %c0_i32_1 = arith.constant 0 : i32
    return %arg0, %c0_i32, %c0_i32_0 : i32, i32, i32
  }
  func.func @transform_1(%arg0: i32) -> (i32, i32, i32) {
    %c0_i32 = arith.constant 0 : i32
    %c0_i32_0 = arith.constant 0 : i32
    %c0_i32_1 = arith.constant 0 : i32
    return %arg0, %c0_i32, %c0_i32_0 : i32, i32, i32
  }
  func.func @transform_2(%arg0: i32) -> (i32, i32, i32) {
    %c0_i32 = arith.constant 0 : i32
    %c0_i32_0 = arith.constant 0 : i32
    %c0_i32_1 = arith.constant 0 : i32
    return %arg0, %c0_i32, %c0_i32_0 : i32, i32, i32
  }
  func.func @transform_3(%arg0: i32) -> (i32, i32, i32) {
    %c0_i32 = arith.constant 0 : i32
    %c0_i32_0 = arith.constant 0 : i32
    %c0_i32_1 = arith.constant 0 : i32
    return %arg0, %c0_i32, %c0_i32_0 : i32, i32, i32
  }
  func.func @transform_4(%arg0: i32) -> (i32, i32, i32) {
    %c0_i32 = arith.constant 0 : i32
    %c0_i32_0 = arith.constant 0 : i32
    %c0_i32_1 = arith.constant 0 : i32
    return %arg0, %c0_i32, %c0_i32_0 : i32, i32, i32
  }
}

module attributes {stable_mosaic.version = 11 : i64} {
  func.func @_linear_kernel(%arg0: i32, %arg1: i32, %arg2: i32, %arg3: memref<32x128xf32, #tpu.memory_space<vmem>>, %arg4: memref<128x128xbf16, #tpu.memory_space<vmem>>, %arg5: memref<1x128xf32, #tpu.memory_space<vmem>>, %arg6: memref<32x128xf32, #tpu.memory_space<vmem>>, %arg7: memref<32x128xf32, #tpu.memory_space<vmem>>) attributes {dimension_semantics = [#tpu.dimension_semantics<parallel>, #tpu.dimension_semantics<parallel>, #tpu.dimension_semantics<arbitrary>], iteration_bounds = array<i64: 1, 1, 1>, scalar_prefetch = 0 : i64, scratch_operands = 1 : i64, tpu.core_type = #tpu.core_type<tc>, window_params = [{transform_indices = @transform_0, window_bounds = array<i64: 32, 128>}, {transform_indices = @transform_1, window_bounds = array<i64: 128, 128>}, {transform_indices = @transform_2, window_bounds = array<i64: 1, 128>}, {transform_indices = @transform_3, window_bounds = array<i64: 32, 128>}]} {
    %c0_i32 = arith.constant 0 : i32
    %0 = arith.cmpi eq, %arg2, %c0_i32 : i32
    %1 = arith.extui %0 : i1 to i32
    %c0_i32_0 = arith.constant 0 : i32
    %2 = arith.cmpi ne, %1, %c0_i32_0 : i32
    scf.if %2 {
      %cst_10 = arith.constant 0.000000e+00 : f32
      %13 = vector.broadcast %cst_10 : f32 to vector<32x128xf32>
      %c0_11 = arith.constant 0 : index
      %c0_12 = arith.constant 0 : index
      %14 = vector.load %arg7[%c0_11, %c0_12] : memref<32x128xf32, #tpu.memory_space<vmem>>, vector<32x128xf32>
      tpu.vector_store %arg7[%c0_11, %c0_12], %13 {strides = array<i32>} : memref<32x128xf32, #tpu.memory_space<vmem>>, vector<32x128xf32>,
    } else {
    }
    %c0 = arith.constant 0 : index
    %c0_1 = arith.constant 0 : index
    %3 = vector.load %arg7[%c0, %c0_1] : memref<32x128xf32, #tpu.memory_space<vmem>>, vector<32x128xf32>
    %c0_2 = arith.constant 0 : index
    %c0_3 = arith.constant 0 : index
    %4 = vector.load %arg3[%c0_2, %c0_3] : memref<32x128xf32, #tpu.memory_space<vmem>>, vector<32x128xf32>
    %5 = arith.truncf %4 : vector<32x128xf32> to vector<32x128xbf16>
    %c0_4 = arith.constant 0 : index
    %c0_5 = arith.constant 0 : index
    %6 = vector.load %arg4[%c0_4, %c0_5] : memref<128x128xbf16, #tpu.memory_space<vmem>>, vector<128x128xbf16>
    %cst = arith.constant dense<0.000000e+00> : vector<32x128xf32>
    %7 = tpu.matmul %5, %6, %cst {dimension_numbers = #tpu.dot_dimension_numbers<[1], [0], [0], [1], [0, 0, 1, 1], [], []>} : vector<32x128xbf16>, vector<128x128xbf16>, vector<32x128xf32> -> vector<32x128xf32>
    %8 = arith.addf %3, %7 : vector<32x128xf32>
    %c0_6 = arith.constant 0 : index
    %c0_7 = arith.constant 0 : index
    %9 = vector.load %arg7[%c0_6, %c0_7] : memref<32x128xf32, #tpu.memory_space<vmem>>, vector<32x128xf32>
    tpu.vector_store %arg7[%c0_6, %c0_7], %8 {strides = array<i32>} : memref<32x128xf32, #tpu.memory_space<vmem>>, vector<32x128xf32>,
    %c0_i32_8 = arith.constant 0 : i32
    %10 = arith.cmpi eq, %arg2, %c0_i32_8 : i32
    %11 = arith.extui %10 : i1 to i32
    %c0_i32_9 = arith.constant 0 : i32
    %12 = arith.cmpi ne, %11, %c0_i32_9 : i32
    scf.if %12 {
      %c0_10 = arith.constant 0 : index
      %c0_11 = arith.constant 0 : index
      %13 = vector.load %arg7[%c0_10, %c0_11] : memref<32x128xf32, #tpu.memory_space<vmem>>, vector<32x128xf32>
      %c0_12 = arith.constant 0 : index
      %c0_13 = arith.constant 0 : index
      %14 = vector.load %arg5[%c0_12, %c0_13] : memref<1x128xf32, #tpu.memory_space<vmem>>, vector<1x128xf32>
      %15 = vector.broadcast %14 : vector<1x128xf32> to vector<32x128xf32>
      %16 = arith.addf %13, %15 : vector<32x128xf32>
      %c0_14 = arith.constant 0 : index
      %c0_15 = arith.constant 0 : index
      %17 = vector.load %arg6[%c0_14, %c0_15] : memref<32x128xf32, #tpu.memory_space<vmem>>, vector<32x128xf32>
      tpu.vector_store %arg6[%c0_14, %c0_15], %16 {strides = array<i32>} : memref<32x128xf32, #tpu.memory_space<vmem>>, vector<32x128xf32>,
    } else {
    }
    return
  }
  func.func @transform_0(%arg0: i32, %arg1: i32, %arg2: i32) -> (i32, i32) {
    %c0_i32 = arith.constant 0 : i32
    return %arg0, %arg2 : i32, i32
  }
  func.func @transform_1(%arg0: i32, %arg1: i32, %arg2: i32) -> (i32, i32) {
    %c0_i32 = arith.constant 0 : i32
    return %arg2, %arg1 : i32, i32
  }
  func.func @transform_2(%arg0: i32, %arg1: i32, %arg2: i32) -> (i32, i32) {
    %c0_i32 = arith.constant 0 : i32
    %c0_i32_0 = arith.constant 0 : i32
    return %c0_i32, %arg1 : i32, i32
  }
  func.func @transform_3(%arg0: i32, %arg1: i32, %arg2: i32) -> (i32, i32) {
    %c0_i32 = arith.constant 0 : i32
    return %arg0, %arg1 : i32, i32
  }
}

module attributes {stable_mosaic.version = 11 : i64} {
  func.func @_add_ln_kernel(%arg0: i32, %arg1: memref<32x128xf32, #tpu.memory_space<vmem>>, %arg2: memref<32x128xf32, #tpu.memory_space<vmem>>, %arg3: memref<1x128xf32, #tpu.memory_space<vmem>>, %arg4: memref<1x128xf32, #tpu.memory_space<vmem>>, %arg5: memref<32x128xf32, #tpu.memory_space<vmem>>) attributes {dimension_semantics = [#tpu.dimension_semantics<parallel>], iteration_bounds = array<i64: 1>, scalar_prefetch = 0 : i64, scratch_operands = 0 : i64, tpu.core_type = #tpu.core_type<tc>, window_params = [{transform_indices = @transform_0, window_bounds = array<i64: 32, 128>}, {transform_indices = @transform_1, window_bounds = array<i64: 32, 128>}, {pipeline_mode = #tpu.pipeline_mode<synchronous>, transform_indices = @transform_2, window_bounds = array<i64: 1, 128>}, {pipeline_mode = #tpu.pipeline_mode<synchronous>, transform_indices = @transform_3, window_bounds = array<i64: 1, 128>}, {transform_indices = @transform_4, window_bounds = array<i64: 32, 128>}]} {
    %c0 = arith.constant 0 : index
    %c0_0 = arith.constant 0 : index
    %0 = vector.load %arg1[%c0, %c0_0] : memref<32x128xf32, #tpu.memory_space<vmem>>, vector<32x128xf32>
    %c0_1 = arith.constant 0 : index
    %c0_2 = arith.constant 0 : index
    %1 = vector.load %arg2[%c0_1, %c0_2] : memref<32x128xf32, #tpu.memory_space<vmem>>, vector<32x128xf32>
    %2 = arith.addf %0, %1 : vector<32x128xf32>
    %cst = arith.constant dense<0.000000e+00> : vector<32xf32>
    %3 = vector.multi_reduction <add>, %2, %cst [1] : vector<32x128xf32> to vector<32xf32>
    %4 = vector.shape_cast %3 : vector<32xf32> to vector<32x1xf32>
    %cst_3 = arith.constant 1.280000e+02 : f32
    %5 = vector.broadcast %cst_3 : f32 to vector<32x1xf32>
    %6 = arith.divf %4, %5 : vector<32x1xf32>
    %7 = vector.broadcast %6 : vector<32x1xf32> to vector<32x128xf32>
    %8 = arith.subf %2, %7 : vector<32x128xf32>
    %9 = arith.mulf %8, %8 : vector<32x128xf32>
    %cst_4 = arith.constant dense<0.000000e+00> : vector<32xf32>
    %10 = vector.multi_reduction <add>, %9, %cst_4 [1] : vector<32x128xf32> to vector<32xf32>
    %11 = vector.shape_cast %10 : vector<32xf32> to vector<32x1xf32>
    %cst_5 = arith.constant 1.280000e+02 : f32
    %12 = vector.broadcast %cst_5 : f32 to vector<32x1xf32>
    %13 = arith.divf %11, %12 : vector<32x1xf32>
    %cst_6 = arith.constant 9.99999974E-6 : f32
    %14 = vector.broadcast %cst_6 : f32 to vector<32x1xf32>
    %15 = arith.addf %13, %14 : vector<32x1xf32>
    %16 = math.rsqrt %15 : vector<32x1xf32>
    %17 = vector.broadcast %16 : vector<32x1xf32> to vector<32x128xf32>
    %18 = arith.mulf %8, %17 : vector<32x128xf32>
    %c0_7 = arith.constant 0 : index
    %c0_8 = arith.constant 0 : index
    %19 = vector.load %arg3[%c0_7, %c0_8] : memref<1x128xf32, #tpu.memory_space<vmem>>, vector<1x128xf32>
    %20 = vector.broadcast %19 : vector<1x128xf32> to vector<32x128xf32>
    %21 = arith.mulf %18, %20 : vector<32x128xf32>
    %c0_9 = arith.constant 0 : index
    %c0_10 = arith.constant 0 : index
    %22 = vector.load %arg4[%c0_9, %c0_10] : memref<1x128xf32, #tpu.memory_space<vmem>>, vector<1x128xf32>
    %23 = vector.broadcast %22 : vector<1x128xf32> to vector<32x128xf32>
    %24 = arith.addf %21, %23 : vector<32x128xf32>
    %c0_11 = arith.constant 0 : index
    %c0_12 = arith.constant 0 : index
    %25 = vector.load %arg5[%c0_11, %c0_12] : memref<32x128xf32, #tpu.memory_space<vmem>>, vector<32x128xf32>
    tpu.vector_store %arg5[%c0_11, %c0_12], %24 {strides = array<i32>} : memref<32x128xf32, #tpu.memory_space<vmem>>, vector<32x128xf32>,
    return
  }
  func.func @transform_0(%arg0: i32) -> (i32, i32) {
    %c0_i32 = arith.constant 0 : i32
    %c0_i32_0 = arith.constant 0 : i32
    return %arg0, %c0_i32 : i32, i32
  }
  func.func @transform_1(%arg0: i32) -> (i32, i32) {
    %c0_i32 = arith.constant 0 : i32
    %c0_i32_0 = arith.constant 0 : i32
    return %arg0, %c0_i32 : i32, i32
  }
  func.func @transform_2(%arg0: i32) -> (i32, i32) {
    %c0_i32 = arith.constant 0 : i32
    %c0_i32_0 = arith.constant 0 : i32
    %c0_i32_1 = arith.constant 0 : i32
    return %c0_i32, %c0_i32_0 : i32, i32
  }
  func.func @transform_3(%arg0: i32) -> (i32, i32) {
    %c0_i32 = arith.constant 0 : i32
    %c0_i32_0 = arith.constant 0 : i32
    %c0_i32_1 = arith.constant 0 : i32
    return %c0_i32, %c0_i32_0 : i32, i32
  }
  func.func @transform_4(%arg0: i32) -> (i32, i32) {
    %c0_i32 = arith.constant 0 : i32
    %c0_i32_0 = arith.constant 0 : i32
    return %arg0, %c0_i32 : i32, i32
  }
}

module attributes {stable_mosaic.version = 11 : i64} {
  func.func @_linear_kernel(%arg0: i32, %arg1: i32, %arg2: i32, %arg3: memref<32x128xf32, #tpu.memory_space<vmem>>, %arg4: memref<128x256xbf16, #tpu.memory_space<vmem>>, %arg5: memref<1x256xf32, #tpu.memory_space<vmem>>, %arg6: memref<32x256xf32, #tpu.memory_space<vmem>>, %arg7: memref<32x256xf32, #tpu.memory_space<vmem>>) attributes {dimension_semantics = [#tpu.dimension_semantics<parallel>, #tpu.dimension_semantics<parallel>, #tpu.dimension_semantics<arbitrary>], iteration_bounds = array<i64: 1, 1, 1>, scalar_prefetch = 0 : i64, scratch_operands = 1 : i64, tpu.core_type = #tpu.core_type<tc>, window_params = [{transform_indices = @transform_0, window_bounds = array<i64: 32, 128>}, {transform_indices = @transform_1, window_bounds = array<i64: 128, 256>}, {transform_indices = @transform_2, window_bounds = array<i64: 1, 256>}, {transform_indices = @transform_3, window_bounds = array<i64: 32, 256>}]} {
    %c0_i32 = arith.constant 0 : i32
    %0 = arith.cmpi eq, %arg2, %c0_i32 : i32
    %1 = arith.extui %0 : i1 to i32
    %c0_i32_0 = arith.constant 0 : i32
    %2 = arith.cmpi ne, %1, %c0_i32_0 : i32
    scf.if %2 {
      %cst_10 = arith.constant 0.000000e+00 : f32
      %13 = vector.broadcast %cst_10 : f32 to vector<32x256xf32>
      %c0_11 = arith.constant 0 : index
      %c0_12 = arith.constant 0 : index
      %14 = vector.load %arg7[%c0_11, %c0_12] : memref<32x256xf32, #tpu.memory_space<vmem>>, vector<32x256xf32>
      tpu.vector_store %arg7[%c0_11, %c0_12], %13 {strides = array<i32>} : memref<32x256xf32, #tpu.memory_space<vmem>>, vector<32x256xf32>,
    } else {
    }
    %c0 = arith.constant 0 : index
    %c0_1 = arith.constant 0 : index
    %3 = vector.load %arg7[%c0, %c0_1] : memref<32x256xf32, #tpu.memory_space<vmem>>, vector<32x256xf32>
    %c0_2 = arith.constant 0 : index
    %c0_3 = arith.constant 0 : index
    %4 = vector.load %arg3[%c0_2, %c0_3] : memref<32x128xf32, #tpu.memory_space<vmem>>, vector<32x128xf32>
    %5 = arith.truncf %4 : vector<32x128xf32> to vector<32x128xbf16>
    %c0_4 = arith.constant 0 : index
    %c0_5 = arith.constant 0 : index
    %6 = vector.load %arg4[%c0_4, %c0_5] : memref<128x256xbf16, #tpu.memory_space<vmem>>, vector<128x256xbf16>
    %cst = arith.constant dense<0.000000e+00> : vector<32x256xf32>
    %7 = tpu.matmul %5, %6, %cst {dimension_numbers = #tpu.dot_dimension_numbers<[1], [0], [0], [1], [0, 0, 1, 1], [], []>} : vector<32x128xbf16>, vector<128x256xbf16>, vector<32x256xf32> -> vector<32x256xf32>
    %8 = arith.addf %3, %7 : vector<32x256xf32>
    %c0_6 = arith.constant 0 : index
    %c0_7 = arith.constant 0 : index
    %9 = vector.load %arg7[%c0_6, %c0_7] : memref<32x256xf32, #tpu.memory_space<vmem>>, vector<32x256xf32>
    tpu.vector_store %arg7[%c0_6, %c0_7], %8 {strides = array<i32>} : memref<32x256xf32, #tpu.memory_space<vmem>>, vector<32x256xf32>,
    %c0_i32_8 = arith.constant 0 : i32
    %10 = arith.cmpi eq, %arg2, %c0_i32_8 : i32
    %11 = arith.extui %10 : i1 to i32
    %c0_i32_9 = arith.constant 0 : i32
    %12 = arith.cmpi ne, %11, %c0_i32_9 : i32
    scf.if %12 {
      %c0_10 = arith.constant 0 : index
      %c0_11 = arith.constant 0 : index
      %13 = vector.load %arg7[%c0_10, %c0_11] : memref<32x256xf32, #tpu.memory_space<vmem>>, vector<32x256xf32>
      %c0_12 = arith.constant 0 : index
      %c0_13 = arith.constant 0 : index
      %14 = vector.load %arg5[%c0_12, %c0_13] : memref<1x256xf32, #tpu.memory_space<vmem>>, vector<1x256xf32>
      %15 = vector.broadcast %14 : vector<1x256xf32> to vector<32x256xf32>
      %16 = arith.addf %13, %15 : vector<32x256xf32>
      %cst_14 = arith.constant 0.000000e+00 : f32
      %17 = vector.broadcast %cst_14 : f32 to vector<32x256xf32>
      %18 = arith.maximumf %16, %17 : vector<32x256xf32>
      %c0_15 = arith.constant 0 : index
      %c0_16 = arith.constant 0 : index
      %19 = vector.load %arg6[%c0_15, %c0_16] : memref<32x256xf32, #tpu.memory_space<vmem>>, vector<32x256xf32>
      tpu.vector_store %arg6[%c0_15, %c0_16], %18 {strides = array<i32>} : memref<32x256xf32, #tpu.memory_space<vmem>>, vector<32x256xf32>,
    } else {
    }
    return
  }
  func.func @transform_0(%arg0: i32, %arg1: i32, %arg2: i32) -> (i32, i32) {
    %c0_i32 = arith.constant 0 : i32
    return %arg0, %arg2 : i32, i32
  }
  func.func @transform_1(%arg0: i32, %arg1: i32, %arg2: i32) -> (i32, i32) {
    %c0_i32 = arith.constant 0 : i32
    return %arg2, %arg1 : i32, i32
  }
  func.func @transform_2(%arg0: i32, %arg1: i32, %arg2: i32) -> (i32, i32) {
    %c0_i32 = arith.constant 0 : i32
    %c0_i32_0 = arith.constant 0 : i32
    return %c0_i32, %arg1 : i32, i32
  }
  func.func @transform_3(%arg0: i32, %arg1: i32, %arg2: i32) -> (i32, i32) {
    %c0_i32 = arith.constant 0 : i32
    return %arg0, %arg1 : i32, i32
  }
}

module attributes {stable_mosaic.version = 11 : i64} {
  func.func @_linear_kernel(%arg0: i32, %arg1: i32, %arg2: i32, %arg3: memref<32x256xf32, #tpu.memory_space<vmem>>, %arg4: memref<256x128xbf16, #tpu.memory_space<vmem>>, %arg5: memref<1x128xf32, #tpu.memory_space<vmem>>, %arg6: memref<32x128xf32, #tpu.memory_space<vmem>>, %arg7: memref<32x128xf32, #tpu.memory_space<vmem>>) attributes {dimension_semantics = [#tpu.dimension_semantics<parallel>, #tpu.dimension_semantics<parallel>, #tpu.dimension_semantics<arbitrary>], iteration_bounds = array<i64: 1, 1, 1>, scalar_prefetch = 0 : i64, scratch_operands = 1 : i64, tpu.core_type = #tpu.core_type<tc>, window_params = [{transform_indices = @transform_0, window_bounds = array<i64: 32, 256>}, {transform_indices = @transform_1, window_bounds = array<i64: 256, 128>}, {transform_indices = @transform_2, window_bounds = array<i64: 1, 128>}, {transform_indices = @transform_3, window_bounds = array<i64: 32, 128>}]} {
    %c0_i32 = arith.constant 0 : i32
    %0 = arith.cmpi eq, %arg2, %c0_i32 : i32
    %1 = arith.extui %0 : i1 to i32
    %c0_i32_0 = arith.constant 0 : i32
    %2 = arith.cmpi ne, %1, %c0_i32_0 : i32
    scf.if %2 {
      %cst_10 = arith.constant 0.000000e+00 : f32
      %13 = vector.broadcast %cst_10 : f32 to vector<32x128xf32>
      %c0_11 = arith.constant 0 : index
      %c0_12 = arith.constant 0 : index
      %14 = vector.load %arg7[%c0_11, %c0_12] : memref<32x128xf32, #tpu.memory_space<vmem>>, vector<32x128xf32>
      tpu.vector_store %arg7[%c0_11, %c0_12], %13 {strides = array<i32>} : memref<32x128xf32, #tpu.memory_space<vmem>>, vector<32x128xf32>,
    } else {
    }
    %c0 = arith.constant 0 : index
    %c0_1 = arith.constant 0 : index
    %3 = vector.load %arg7[%c0, %c0_1] : memref<32x128xf32, #tpu.memory_space<vmem>>, vector<32x128xf32>
    %c0_2 = arith.constant 0 : index
    %c0_3 = arith.constant 0 : index
    %4 = vector.load %arg3[%c0_2, %c0_3] : memref<32x256xf32, #tpu.memory_space<vmem>>, vector<32x256xf32>
    %5 = arith.truncf %4 : vector<32x256xf32> to vector<32x256xbf16>
    %c0_4 = arith.constant 0 : index
    %c0_5 = arith.constant 0 : index
    %6 = vector.load %arg4[%c0_4, %c0_5] : memref<256x128xbf16, #tpu.memory_space<vmem>>, vector<256x128xbf16>
    %cst = arith.constant dense<0.000000e+00> : vector<32x128xf32>
    %7 = tpu.matmul %5, %6, %cst {dimension_numbers = #tpu.dot_dimension_numbers<[1], [0], [0], [1], [0, 0, 1, 1], [], []>} : vector<32x256xbf16>, vector<256x128xbf16>, vector<32x128xf32> -> vector<32x128xf32>
    %8 = arith.addf %3, %7 : vector<32x128xf32>
    %c0_6 = arith.constant 0 : index
    %c0_7 = arith.constant 0 : index
    %9 = vector.load %arg7[%c0_6, %c0_7] : memref<32x128xf32, #tpu.memory_space<vmem>>, vector<32x128xf32>
    tpu.vector_store %arg7[%c0_6, %c0_7], %8 {strides = array<i32>} : memref<32x128xf32, #tpu.memory_space<vmem>>, vector<32x128xf32>,
    %c0_i32_8 = arith.constant 0 : i32
    %10 = arith.cmpi eq, %arg2, %c0_i32_8 : i32
    %11 = arith.extui %10 : i1 to i32
    %c0_i32_9 = arith.constant 0 : i32
    %12 = arith.cmpi ne, %11, %c0_i32_9 : i32
    scf.if %12 {
      %c0_10 = arith.constant 0 : index
      %c0_11 = arith.constant 0 : index
      %13 = vector.load %arg7[%c0_10, %c0_11] : memref<32x128xf32, #tpu.memory_space<vmem>>, vector<32x128xf32>
      %c0_12 = arith.constant 0 : index
      %c0_13 = arith.constant 0 : index
      %14 = vector.load %arg5[%c0_12, %c0_13] : memref<1x128xf32, #tpu.memory_space<vmem>>, vector<1x128xf32>
      %15 = vector.broadcast %14 : vector<1x128xf32> to vector<32x128xf32>
      %16 = arith.addf %13, %15 : vector<32x128xf32>
      %c0_14 = arith.constant 0 : index
      %c0_15 = arith.constant 0 : index
      %17 = vector.load %arg6[%c0_14, %c0_15] : memref<32x128xf32, #tpu.memory_space<vmem>>, vector<32x128xf32>
      tpu.vector_store %arg6[%c0_14, %c0_15], %16 {strides = array<i32>} : memref<32x128xf32, #tpu.memory_space<vmem>>, vector<32x128xf32>,
    } else {
    }
    return
  }
  func.func @transform_0(%arg0: i32, %arg1: i32, %arg2: i32) -> (i32, i32) {
    %c0_i32 = arith.constant 0 : i32
    return %arg0, %arg2 : i32, i32
  }
  func.func @transform_1(%arg0: i32, %arg1: i32, %arg2: i32) -> (i32, i32) {
    %c0_i32 = arith.constant 0 : i32
    return %arg2, %arg1 : i32, i32
  }
  func.func @transform_2(%arg0: i32, %arg1: i32, %arg2: i32) -> (i32, i32) {
    %c0_i32 = arith.constant 0 : i32
    %c0_i32_0 = arith.constant 0 : i32
    return %c0_i32, %arg1 : i32, i32
  }
  func.func @transform_3(%arg0: i32, %arg1: i32, %arg2: i32) -> (i32, i32) {
    %c0_i32 = arith.constant 0 : i32
    return %arg0, %arg1 : i32, i32
  }
}

module attributes {stable_mosaic.version = 11 : i64} {
  func.func @_linear_kernel(%arg0: i32, %arg1: i32, %arg2: i32, %arg3: memref<32x128xf32, #tpu.memory_space<vmem>>, %arg4: memref<128x256xbf16, #tpu.memory_space<vmem>>, %arg5: memref<1x256xf32, #tpu.memory_space<vmem>>, %arg6: memref<32x256xf32, #tpu.memory_space<vmem>>, %arg7: memref<32x256xf32, #tpu.memory_space<vmem>>) attributes {dimension_semantics = [#tpu.dimension_semantics<parallel>, #tpu.dimension_semantics<parallel>, #tpu.dimension_semantics<arbitrary>], iteration_bounds = array<i64: 1, 1, 1>, scalar_prefetch = 0 : i64, scratch_operands = 1 : i64, tpu.core_type = #tpu.core_type<tc>, window_params = [{transform_indices = @transform_0, window_bounds = array<i64: 32, 128>}, {transform_indices = @transform_1, window_bounds = array<i64: 128, 256>}, {transform_indices = @transform_2, window_bounds = array<i64: 1, 256>}, {transform_indices = @transform_3, window_bounds = array<i64: 32, 256>}]} {
    %c0_i32 = arith.constant 0 : i32
    %0 = arith.cmpi eq, %arg2, %c0_i32 : i32
    %1 = arith.extui %0 : i1 to i32
    %c0_i32_0 = arith.constant 0 : i32
    %2 = arith.cmpi ne, %1, %c0_i32_0 : i32
    scf.if %2 {
      %cst_10 = arith.constant 0.000000e+00 : f32
      %13 = vector.broadcast %cst_10 : f32 to vector<32x256xf32>
      %c0_11 = arith.constant 0 : index
      %c0_12 = arith.constant 0 : index
      %14 = vector.load %arg7[%c0_11, %c0_12] : memref<32x256xf32, #tpu.memory_space<vmem>>, vector<32x256xf32>
      tpu.vector_store %arg7[%c0_11, %c0_12], %13 {strides = array<i32>} : memref<32x256xf32, #tpu.memory_space<vmem>>, vector<32x256xf32>,
    } else {
    }
    %c0 = arith.constant 0 : index
    %c0_1 = arith.constant 0 : index
    %3 = vector.load %arg7[%c0, %c0_1] : memref<32x256xf32, #tpu.memory_space<vmem>>, vector<32x256xf32>
    %c0_2 = arith.constant 0 : index
    %c0_3 = arith.constant 0 : index
    %4 = vector.load %arg3[%c0_2, %c0_3] : memref<32x128xf32, #tpu.memory_space<vmem>>, vector<32x128xf32>
    %5 = arith.truncf %4 : vector<32x128xf32> to vector<32x128xbf16>
    %c0_4 = arith.constant 0 : index
    %c0_5 = arith.constant 0 : index
    %6 = vector.load %arg4[%c0_4, %c0_5] : memref<128x256xbf16, #tpu.memory_space<vmem>>, vector<128x256xbf16>
    %cst = arith.constant dense<0.000000e+00> : vector<32x256xf32>
    %7 = tpu.matmul %5, %6, %cst {dimension_numbers = #tpu.dot_dimension_numbers<[1], [0], [0], [1], [0, 0, 1, 1], [], []>} : vector<32x128xbf16>, vector<128x256xbf16>, vector<32x256xf32> -> vector<32x256xf32>
    %8 = arith.addf %3, %7 : vector<32x256xf32>
    %c0_6 = arith.constant 0 : index
    %c0_7 = arith.constant 0 : index
    %9 = vector.load %arg7[%c0_6, %c0_7] : memref<32x256xf32, #tpu.memory_space<vmem>>, vector<32x256xf32>
    tpu.vector_store %arg7[%c0_6, %c0_7], %8 {strides = array<i32>} : memref<32x256xf32, #tpu.memory_space<vmem>>, vector<32x256xf32>,
    %c0_i32_8 = arith.constant 0 : i32
    %10 = arith.cmpi eq, %arg2, %c0_i32_8 : i32
    %11 = arith.extui %10 : i1 to i32
    %c0_i32_9 = arith.constant 0 : i32
    %12 = arith.cmpi ne, %11, %c0_i32_9 : i32
    scf.if %12 {
      %c0_10 = arith.constant 0 : index
      %c0_11 = arith.constant 0 : index
      %13 = vector.load %arg7[%c0_10, %c0_11] : memref<32x256xf32, #tpu.memory_space<vmem>>, vector<32x256xf32>
      %c0_12 = arith.constant 0 : index
      %c0_13 = arith.constant 0 : index
      %14 = vector.load %arg5[%c0_12, %c0_13] : memref<1x256xf32, #tpu.memory_space<vmem>>, vector<1x256xf32>
      %15 = vector.broadcast %14 : vector<1x256xf32> to vector<32x256xf32>
      %16 = arith.addf %13, %15 : vector<32x256xf32>
      %c0_14 = arith.constant 0 : index
      %c0_15 = arith.constant 0 : index
      %17 = vector.load %arg6[%c0_14, %c0_15] : memref<32x256xf32, #tpu.memory_space<vmem>>, vector<32x256xf32>
      tpu.vector_store %arg6[%c0_14, %c0_15], %16 {strides = array<i32>} : memref<32x256xf32, #tpu.memory_space<vmem>>, vector<32x256xf32>,
    } else {
    }
    return
  }
  func.func @transform_0(%arg0: i32, %arg1: i32, %arg2: i32) -> (i32, i32) {
    %c0_i32 = arith.constant 0 : i32
    return %arg0, %arg2 : i32, i32
  }
  func.func @transform_1(%arg0: i32, %arg1: i32, %arg2: i32) -> (i32, i32) {
    %c0_i32 = arith.constant 0 : i32
    return %arg2, %arg1 : i32, i32
  }
  func.func @transform_2(%arg0: i32, %arg1: i32, %arg2: i32) -> (i32, i32) {
    %c0_i32 = arith.constant 0 : i32
    %c0_i32_0 = arith.constant 0 : i32
    return %c0_i32, %arg1 : i32, i32
  }
  func.func @transform_3(%arg0: i32, %arg1: i32, %arg2: i32) -> (i32, i32) {
    %c0_i32 = arith.constant 0 : i32
    return %arg0, %arg1 : i32, i32
  }
}

module attributes {stable_mosaic.version = 11 : i64} {
  func.func @_linear_kernel(%arg0: i32, %arg1: i32, %arg2: i32, %arg3: memref<32x128xf32, #tpu.memory_space<vmem>>, %arg4: memref<128x128xbf16, #tpu.memory_space<vmem>>, %arg5: memref<1x128xf32, #tpu.memory_space<vmem>>, %arg6: memref<32x128xf32, #tpu.memory_space<vmem>>, %arg7: memref<32x128xf32, #tpu.memory_space<vmem>>) attributes {dimension_semantics = [#tpu.dimension_semantics<parallel>, #tpu.dimension_semantics<parallel>, #tpu.dimension_semantics<arbitrary>], iteration_bounds = array<i64: 1, 1, 1>, scalar_prefetch = 0 : i64, scratch_operands = 1 : i64, tpu.core_type = #tpu.core_type<tc>, window_params = [{transform_indices = @transform_0, window_bounds = array<i64: 32, 128>}, {transform_indices = @transform_1, window_bounds = array<i64: 128, 128>}, {transform_indices = @transform_2, window_bounds = array<i64: 1, 128>}, {transform_indices = @transform_3, window_bounds = array<i64: 32, 128>}]} {
    %c0_i32 = arith.constant 0 : i32
    %0 = arith.cmpi eq, %arg2, %c0_i32 : i32
    %1 = arith.extui %0 : i1 to i32
    %c0_i32_0 = arith.constant 0 : i32
    %2 = arith.cmpi ne, %1, %c0_i32_0 : i32
    scf.if %2 {
      %cst_10 = arith.constant 0.000000e+00 : f32
      %13 = vector.broadcast %cst_10 : f32 to vector<32x128xf32>
      %c0_11 = arith.constant 0 : index
      %c0_12 = arith.constant 0 : index
      %14 = vector.load %arg7[%c0_11, %c0_12] : memref<32x128xf32, #tpu.memory_space<vmem>>, vector<32x128xf32>
      tpu.vector_store %arg7[%c0_11, %c0_12], %13 {strides = array<i32>} : memref<32x128xf32, #tpu.memory_space<vmem>>, vector<32x128xf32>,
    } else {
    }
    %c0 = arith.constant 0 : index
    %c0_1 = arith.constant 0 : index
    %3 = vector.load %arg7[%c0, %c0_1] : memref<32x128xf32, #tpu.memory_space<vmem>>, vector<32x128xf32>
    %c0_2 = arith.constant 0 : index
    %c0_3 = arith.constant 0 : index
    %4 = vector.load %arg3[%c0_2, %c0_3] : memref<32x128xf32, #tpu.memory_space<vmem>>, vector<32x128xf32>
    %5 = arith.truncf %4 : vector<32x128xf32> to vector<32x128xbf16>
    %c0_4 = arith.constant 0 : index
    %c0_5 = arith.constant 0 : index
    %6 = vector.load %arg4[%c0_4, %c0_5] : memref<128x128xbf16, #tpu.memory_space<vmem>>, vector<128x128xbf16>
    %cst = arith.constant dense<0.000000e+00> : vector<32x128xf32>
    %7 = tpu.matmul %5, %6, %cst {dimension_numbers = #tpu.dot_dimension_numbers<[1], [0], [0], [1], [0, 0, 1, 1], [], []>} : vector<32x128xbf16>, vector<128x128xbf16>, vector<32x128xf32> -> vector<32x128xf32>
    %8 = arith.addf %3, %7 : vector<32x128xf32>
    %c0_6 = arith.constant 0 : index
    %c0_7 = arith.constant 0 : index
    %9 = vector.load %arg7[%c0_6, %c0_7] : memref<32x128xf32, #tpu.memory_space<vmem>>, vector<32x128xf32>
    tpu.vector_store %arg7[%c0_6, %c0_7], %8 {strides = array<i32>} : memref<32x128xf32, #tpu.memory_space<vmem>>, vector<32x128xf32>,
    %c0_i32_8 = arith.constant 0 : i32
    %10 = arith.cmpi eq, %arg2, %c0_i32_8 : i32
    %11 = arith.extui %10 : i1 to i32
    %c0_i32_9 = arith.constant 0 : i32
    %12 = arith.cmpi ne, %11, %c0_i32_9 : i32
    scf.if %12 {
      %c0_10 = arith.constant 0 : index
      %c0_11 = arith.constant 0 : index
      %13 = vector.load %arg7[%c0_10, %c0_11] : memref<32x128xf32, #tpu.memory_space<vmem>>, vector<32x128xf32>
      %c0_12 = arith.constant 0 : index
      %c0_13 = arith.constant 0 : index
      %14 = vector.load %arg5[%c0_12, %c0_13] : memref<1x128xf32, #tpu.memory_space<vmem>>, vector<1x128xf32>
      %15 = vector.broadcast %14 : vector<1x128xf32> to vector<32x128xf32>
      %16 = arith.addf %13, %15 : vector<32x128xf32>
      %c0_14 = arith.constant 0 : index
      %c0_15 = arith.constant 0 : index
      %17 = vector.load %arg6[%c0_14, %c0_15] : memref<32x128xf32, #tpu.memory_space<vmem>>, vector<32x128xf32>
      tpu.vector_store %arg6[%c0_14, %c0_15], %16 {strides = array<i32>} : memref<32x128xf32, #tpu.memory_space<vmem>>, vector<32x128xf32>,
    } else {
    }
    return
  }
  func.func @transform_0(%arg0: i32, %arg1: i32, %arg2: i32) -> (i32, i32) {
    %c0_i32 = arith.constant 0 : i32
    return %arg0, %arg2 : i32, i32
  }
  func.func @transform_1(%arg0: i32, %arg1: i32, %arg2: i32) -> (i32, i32) {
    %c0_i32 = arith.constant 0 : i32
    return %arg2, %arg1 : i32, i32
  }
  func.func @transform_2(%arg0: i32, %arg1: i32, %arg2: i32) -> (i32, i32) {
    %c0_i32 = arith.constant 0 : i32
    %c0_i32_0 = arith.constant 0 : i32
    return %c0_i32, %arg1 : i32, i32
  }
  func.func @transform_3(%arg0: i32, %arg1: i32, %arg2: i32) -> (i32, i32) {
    %c0_i32 = arith.constant 0 : i32
    return %arg0, %arg1 : i32, i32
  }
}

</mosaic_0001>

<bundles_post_ra>
// kernel: transformer_forward.56
= control target key start
LH: loop header
LB: loop body
LE: loop exit
PB: predicated region body
PF: predicated region fallthrough
CT: control target
= control target key end

     0   :  { %s181_s0 = inlined_call_operand.vmem [shape: f32[32,128], index: 0, kind: input, shape index: {}]   ;;  %s182_s1 = inlined_call_operand.vmem [shape: f32[32,128], index: 1, kind: input, shape index: {}]   ;;  %s183_s2 = inlined_call_operand.vmem [shape: f32[1,128], index: 2, kind: input, shape index: {}]   ;;  %s184_s3 = inlined_call_operand.vmem [shape: f32[1,128], index: 3, kind: input, shape index: {}]   ;;  %s185_s4 = inlined_call_operand.vmem [shape: f32[32,128], index: 4, kind: output, shape index: {}]  }
   0x1   :  { %v17_v0 = vld [vmem:[%s181_s0] sm:$0xff]  ;;  %v19_v2 = vld [vmem:[%s181_s0 + $0x10] sm:$0xff]  ;;  %v18_v5 = vld [vmem:[%s181_s0 + $0x8] sm:$0xff] }
   0x2   :  { %v21_v1 = vld [vmem:[%s182_s1] sm:$0xff]  ;;  %v23_v4 = vld [vmem:[%s182_s1 + $0x10] sm:$0xff]  ;;  %v22_v6 = vld [vmem:[%s182_s1 + $0x8] sm:$0xff] }
   0x3   :  { %v25_v3 = vadd.f32 %v21_v1, %v17_v0  ;;  %v27_v7 = vadd.f32 %v23_v4, %v19_v2  ;;  %v20_v8 = vld [vmem:[%s181_s0 + $0x18] sm:$0xff]  ;;  %v26_v10 = vadd.f32 %v22_v6, %v18_v5  ;;  %v104_v41 = vld [vmem:[%s183_s2] ss:$0 sm:$0xff] }
   0x4   :  { %v24_v9 = vld [vmem:[%s182_s1 + $0x18] sm:$0xff]  ;;  %v105_v43 = vld [vmem:[%s184_s3] ss:$0 sm:$0xff] }
   0x5   :  { %29 = vadd.xlane.f32.xlu0 %v25_v3  ;;  %33 = vadd.xlane.f32.xlu1 %v27_v7  ;;  %v28_v11 = vadd.f32 %v24_v9, %v20_v8 }
   0x9   :  { %31 = vadd.xlane.f32.xlu0 %v26_v10  ;;  %35 = vadd.xlane.f32.xlu1 %v28_v11 }
  0x8e   :  { %v30_v12 = vpop.xlane.xlu0 %29  ;;  %v34_v14 = vpop.xlane.xlu1 %33 }
  0x8f   :  { %v38_v13 = vmul.f32 0.0078125, %v30_v12  ;;  %v40_v15 = vmul.f32 0.0078125, %v34_v14 }
  0x91   :  { %v42_v16 = vsub.f32 %v25_v3, %v38_v13  ;;  %v44_v17 = vsub.f32 %v27_v7, %v40_v15 }
  0x92   :  { %v32_v18 = vpop.xlane.xlu0 %31  ;;  %v36_v21 = vpop.xlane.xlu1 %35 }
  0x93   :  { %v39_v19 = vmul.f32 0.0078125, %v32_v18  ;;  %v46_v20 = vmul.f32 %v42_v16, %v42_v16  ;;  %v41_v22 = vmul.f32 0.0078125, %v36_v21  ;;  %v48_v24 = vmul.f32 %v44_v17, %v44_v17 }
  0x95   :  { %v43_v23 = vsub.f32 %v26_v10, %v39_v19  ;;  %50 = vadd.xlane.f32.xlu0 %v46_v20  ;;  %v45_v25 = vsub.f32 %v28_v11, %v41_v22 }
  0x97   :  { %v47_v26 = vmul.f32 %v43_v23, %v43_v23  ;;  %v49_v27 = vmul.f32 %v45_v25, %v45_v25 }
  0x99   :  { %54 = vadd.xlane.f32.xlu0 %v48_v24  ;;  %52 = vadd.xlane.f32.xlu1 %v47_v26 }
  0x9d   :  { %56 = vadd.xlane.f32.xlu1 %v49_v27 }
 0x11e   :  { %v51_v28 = vpop.xlane.xlu0 %50 }
 0x11f   :  { %v58_v29 = vmul.f32 0.0078125, %v51_v28 }
 0x121   :  { %v62_v30 = vadd.f32 1e-05, %v58_v29 }
 0x122   :  { %v53_v31 = vpop.xlane.xlu1 %52  ;;  %v55_v32 = vpop.xlane.xlu0 %54 }
 0x123   :  { %106 = vrsqrt.f32 %v62_v30  ;;  %v59_v33 = vmul.f32 0.0078125, %v53_v31  ;;  %v60_v34 = vmul.f32 0.0078125, %v55_v32 }
 0x125   :  { %v63_v35 = vadd.f32 1e-05, %v59_v33  ;;  %v64_v36 = vadd.f32 1e-05, %v60_v34 }
 0x126   :  { %v57_v37 = vpop.xlane.xlu1 %56 }
 0x127   :  { %108 = vrsqrt.f32 %v63_v35  ;;  %v61_v38 = vmul.f32 0.0078125, %v57_v37 }
 0x128   :  { %110 = vrsqrt.f32 %v64_v36 }
 0x129   :  { %v65_v39 = vadd.f32 1e-05, %v61_v38 }
 0x12b   :  { %112 = vrsqrt.f32 %v65_v39 }
 0x130   :  { %v107_v40 = vpop.eup %106 }
 0x131   :  { %v70_v42 = vmul.f32 %v107_v40, %v42_v16 }
 0x133   :  { %v81_v44 = vmul.f32 %v104_v41, %v70_v42 }
 0x134   :  { %v109_v45 = vpop.eup %108 }
 0x135   :  { %v111_v46 = vpop.eup %110  ;;  %v92_v47 = vadd.f32 %v105_v43, %v81_v44  ;;  %v71_v48 = vmul.f32 %v109_v45, %v43_v23 }
 0x136   :  { %v72_v49 = vmul.f32 %v111_v46, %v44_v17 }
 0x137   :  { %96 = vst [vmem:[%s185_s4] sm:$0xff] %v92_v47  ;;  %v82_v50 = vmul.f32 %v104_v41, %v71_v48 }
 0x138   :  { %v113_v51 = vpop.eup %112  ;;  %v83_v52 = vmul.f32 %v104_v41, %v72_v49 }
 0x139   :  { %v93_v53 = vadd.f32 %v105_v43, %v82_v50  ;;  %v73_v54 = vmul.f32 %v113_v51, %v45_v25 }
 0x13a   :  { %v94_v55 = vadd.f32 %v105_v43, %v83_v52 }
 0x13b   :  { %97 = vst [vmem:[%s185_s4 + $0x8] sm:$0xff] %v93_v53  ;;  %v84_v56 = vmul.f32 %v104_v41, %v73_v54 }
 0x13c   :  { %98 = vst [vmem:[%s185_s4 + $0x10] sm:$0xff] %v94_v55 }
 0x13d   :  { %v95_v57 = vadd.f32 %v105_v43, %v84_v56 }
 0x13f   :  { %99 = vst [vmem:[%s185_s4 + $0x18] sm:$0xff] %v95_v57 }

// kernel: transformer_forward.53
= control target key start
LH: loop header
LB: loop body
LE: loop exit
PB: predicated region body
PF: predicated region fallthrough
CT: control target
= control target key end

     0   :  { %s822_s12 = smov 0   ;;  %s824_s13 = smov 0   ;;  %s933_s0 = inlined_call_operand.vmem [shape: f32[32,128], index: 0, kind: input, shape index: {}]   ;;  %s934_s1 = inlined_call_operand.vmem [shape: bf16[128,384], index: 1, kind: input, shape index: {}]   ;;  %s935_s2 = inlined_call_operand.vmem [shape: f32[1,384], index: 2, kind: input, shape index: {}]   ;;  %s936_s3 = inlined_call_operand.vmem [shape: f32[32,384], index: 3, kind: output, shape index: {}]  }
   0x1   :  { %s826_s14 = smov 0   ;;  %s828_s15 = smov 0  }
   0x2   :  { %s830_s16 = smov 0  }
   0x3 LB: > { %s28_s17 = sadd.s32 1, %s796_s15  ;;  %s661_s18 = sadd.s32 4294967295, %s800_s16   ;;  %s800_s16 = sphi %s830_s16, %s13_s16   ;;  %s796_s15 = sphi %s828_s15, %s941_s15   ;;  %s792_s14 = sphi %s826_s14, %s940_s14   ;;  %s788_s13 = sphi %s824_s13, %s939_s13   ;;  %s784_s12 = sphi %s822_s12, %s938_s12  }
   0x4   : > { %p30_p0 = scmp.ge.s32.totalorder %s28_s17, 3  ;;  %p76_p1 = scmp.ne.s32.totalorder %s788_s13, %s784_s12 }
   0x5   : > { %p77_p2 = scmp.eq.s32.totalorder %s800_s16, 0  ;;  %p134_p4 = scmp.eq.s32.totalorder %s661_s18, 2 }
   0x6   : > { %s943_s17 = smov (%p30_p0, %s28_s17), 0  ;;  %s69_s20 = sadd.s32 1, %s788_s13 }
   0x7   : > { %p78_p3 = por %p77_p2, %p76_p1  ;;  %s65_s19 = ssub.s32 %s796_s15, %s943_s17 }
   0x8   : > { %p67_p5 = scmp.eq.s32.totalorder %s65_s19, 0  ;;  %p857_p6 = por %p134_p4, %p76_p1 }
   0x9   : > { %p665_p7 = scmp.ge.s32.totalorder %s800_s16, 3 }
   0xa   : > { %s862_s22 = scalar_select %p67_p5, %s788_s13, %s69_s20  }
   0xb   : > { %168 = sbr.rel (%p665_p7) target bundleno = 30 (0x1e), region = 20 }
  0x10   : > { %171 = sbr.rel (!%p78_p3) target bundleno = 30 (0x1e), region = 24  ;;  %s173_s23 = sand.u32 (%p78_p3), 1, %s788_s13  }
  0x11   : > { %s667_s24 = sshll.u32 (%p78_p3), %s796_s15, 2  ;;  %s666_s25 = sshll.u32 (%p78_p3), %s173_s23, 6 }
  0x12   : > { %s870_s28 = scalar_lea.vmem (%p78_p3), %s934_s1, %s667_s24  ;;  %s175_s29 = scalar_lea.vmem (%p78_p3), [#allocation3], %s666_s25 }
  0x13   : > { %v197_v0 = vld [vmem:[%s870_s28] sm:$0xf] (%p78_p3)  ;;  %v199_v1 = vld [vmem:[%s870_s28 + $0xc] sm:$0xf] (%p78_p3)  ;;  %v201_v2 = vld [vmem:[%s870_s28 + $0x18] sm:$0xf] (%p78_p3) }
  0x14   : > { %198 = vst [vmem:[%s175_s29] sm:$0xf] (%p78_p3), %v197_v0  ;;  %200 = vst [vmem:[%s175_s29 + $0x4] sm:$0xf] (%p78_p3), %v199_v1  ;;  %v203_v3 = vld [vmem:[%s870_s28 + $0x24] sm:$0xf] (%p78_p3) }
  0x15   : > { %v205_v4 = vld [vmem:[%s870_s28 + $0x30] sm:$0xf]  ;;  %202 = vst [vmem:[%s175_s29 + $0x8] sm:$0xf] %v201_v2  ;;  %204 = vst [vmem:[%s175_s29 + $0xc] sm:$0xf] %v203_v3 }
  0x16   : > { %206 = vst [vmem:[%s175_s29 + $0x10] sm:$0xf] %v205_v4  ;;  %v207_v5 = vld [vmem:[%s870_s28 + $0x3c] sm:$0xf]  ;;  %v209_v6 = vld [vmem:[%s870_s28 + $0x48] sm:$0xf] }
  0x17   : > { %v211_v7 = vld [vmem:[%s870_s28 + $0x54] sm:$0xf]  ;;  %208 = vst [vmem:[%s175_s29 + $0x14] sm:$0xf] %v207_v5  ;;  %210 = vst [vmem:[%s175_s29 + $0x18] sm:$0xf] %v209_v6 }
  0x18   : > { %212 = vst [vmem:[%s175_s29 + $0x1c] sm:$0xf] %v211_v7  ;;  %v213_v8 = vld [vmem:[%s870_s28 + $0x60] sm:$0xf]  ;;  %v215_v9 = vld [vmem:[%s870_s28 + $0x6c] sm:$0xf] }
  0x19   : > { %v217_v10 = vld [vmem:[%s870_s28 + $0x78] sm:$0xf]  ;;  %214 = vst [vmem:[%s175_s29 + $0x20] sm:$0xf] %v213_v8  ;;  %216 = vst [vmem:[%s175_s29 + $0x24] sm:$0xf] %v215_v9 }
  0x1a   : > { %218 = vst [vmem:[%s175_s29 + $0x28] sm:$0xf] %v217_v10  ;;  %v219_v11 = vld [vmem:[%s870_s28 + $0x84] sm:$0xf]  ;;  %v221_v12 = vld [vmem:[%s870_s28 + $0x90] sm:$0xf] }
  0x1b   : > { %v223_v13 = vld [vmem:[%s870_s28 + $0x9c] sm:$0xf]  ;;  %220 = vst [vmem:[%s175_s29 + $0x2c] sm:$0xf] %v219_v11  ;;  %222 = vst [vmem:[%s175_s29 + $0x30] sm:$0xf] %v221_v12 }
  0x1c   : > { %224 = vst [vmem:[%s175_s29 + $0x34] sm:$0xf] %v223_v13  ;;  %v225_v14 = vld [vmem:[%s870_s28 + $0xa8] sm:$0xf]  ;;  %v227_v15 = vld [vmem:[%s870_s28 + $0xb4] sm:$0xf] }
  0x1d   : > { %226 = vst [vmem:[%s175_s29 + $0x38] sm:$0xf] %v225_v14  ;;  %228 = vst [vmem:[%s175_s29 + $0x3c] sm:$0xf] %v227_v15 }
  0x1e PF: > { %p668_p8 = scmp.ge.s32.totalorder %s800_s16, 1  ;;  %p289_p9 = scmp.lt.s32.totalorder %s800_s16, 4 }
  0x20   : > { %p290_p10 = pnand %p668_p8, %p289_p9 }
  0x21   : > { %s296_s30 = sand.u32 (!%p290_p10), 1, %s784_s12   ;;  %p339_p11 = scmp.lt.s32.totalorder (!%p290_p10), %s792_s14, 2 }
  0x22   : > { %293 = sbr.rel (%p290_p10) target bundleno = 282 (0x11a), region = 69  ;;  %s669_s8 = sshll.u32 (!%p290_p10), %s296_s30, 6 }
  0x23   : > { %s298_s9 = scalar_lea.vmem (!%p290_p10), [#allocation3], %s669_s8  ;;  %s670_s26 = sshll.u32 (!%p290_p10), %s296_s30, 5 }
  0x24   : > { %s328_s27 = scalar_lea.vmem (!%p290_p10), [#allocation4], %s670_s26 }
  0x27   : > { %v356_v16 = vld [vmem:[%s933_s0] sm:$0xff]  ;;  %v357_v17 = vld [vmem:[%s933_s0 + $0x8] sm:$0xff]  ;;  %v754_v19 = vld [vmem:[%s298_s9 + $0x38] sm:$0xff]   ;;  %s340_s20 = scalar_select %p339_p11, %s792_s14, 2 }
  0x28   : > { %v360_v18 = vpack.c.bf16 %v357_v17, %v356_v16  ;;  %v755_v20 = vld [vmem:[%s298_s9 + $0x30] sm:$0xff]   ;;  %694 = vmatprep.subr.bf16.mxu0 %v754_v19  ;;  %v756_v21 = vld [vmem:[%s298_s9 + $0x28] sm:$0xff]   ;;  %v757_v22 = vld [vmem:[%s298_s9 + $0x20] sm:$0xff]   ;;  %s681_s12 = sshll.u32 (%p857_p6), %s792_s14, 3 }
  0x29   : > { %695 = vmatpush3.bf16.msra.mxu0 %v754_v19  ;;  %v758_v23 = vld [vmem:[%s298_s9 + $0x18] sm:$0xff]   ;;  %v759_v24 = vld [vmem:[%s298_s9 + $0x10] sm:$0xff]   ;;  %v760_v25 = vld [vmem:[%s298_s9 + $0x8] sm:$0xff]   ;;  %s341_s25 = scalar_lea.vmem %s935_s2, %s340_s20  ;;  %s516_s30 = scalar_lea.vmem (%p857_p6), %s936_s3, %s681_s12 }
  0x2a   : > { %710 = vmatprep.mubr.bf16.mxu0 %v360_v18  ;;  %696 = vmatprep.subr.bf16.mxu0 %v755_v20  ;;  %v761_v26 = vld [vmem:[%s298_s9] sm:$0xff]   ;;  %v358_v27 = vld [vmem:[%s933_s0 + $0x10] sm:$0xff]  ;;  %v359_v28 = vld [vmem:[%s933_s0 + $0x18] sm:$0xff] }
  0x2b   : > { %v361_v29 = vpack.c.bf16 %v359_v28, %v358_v27  ;;  %v679_v30 = vld [vmem:[%s341_s25] ss:$0 sm:$0xff] }
  0x2d   : > { %697 = vmatpush3.bf16.msra.mxu0 %v755_v20 }
  0x2e   : > { %698 = vmatprep.subr.bf16.mxu0 %v756_v21 }
  0x31   : > { %699 = vmatpush3.bf16.msra.mxu0 %v756_v21 }
  0x32   : > { %700 = vmatprep.subr.bf16.mxu0 %v757_v22 }
  0x35   : > { %701 = vmatpush3.bf16.msra.mxu0 %v757_v22 }
  0x36   : > { %702 = vmatprep.subr.bf16.mxu0 %v758_v23 }
  0x39   : > { %703 = vmatpush3.bf16.msra.mxu0 %v758_v23 }
  0x3a   : > { %704 = vmatprep.subr.bf16.mxu0 %v759_v24 }
  0x3d   : > { %705 = vmatpush3.bf16.msra.mxu0 %v759_v24 }
  0x3e   : > { %706 = vmatprep.subr.bf16.mxu0 %v760_v25 }
  0x41   : > { %707 = vmatpush3.bf16.msra.mxu0 %v760_v25 }
  0x42   : > { %708 = vmatprep.subr.bf16.mxu0 %v761_v26 }
  0x45   : > { %709 = vmatpush3.bf16.msra.mxu0 %v761_v26 }
  0x48   : > { %711 = vmatmul.mubr.bf16.vlgmr.msra.gmra.mxu0 %v361_v29 }
 0x108   : > { %v712_v31 = vpop.f32.mrf.mxu0 }
 0x109   : > { %v499_v32 = vadd.f32 %v712_v31, %v679_v30 }
 0x10a   : > { %v460_v33 = vpop.f32.mrf.mxu0 }
 0x10b   : > { %503 = vst [vmem:[%s328_s27 + $0x10] sm:$0xff] %v499_v32  ;;  %v497_v34 = vadd.f32 %v679_v30, %v460_v33 }
 0x10c   : > { %v713_v35 = vpop.f32.mrf.mxu0 }
 0x10d   : > { %501 = vst [vmem:[%s328_s27] sm:$0xff] %v497_v34  ;;  %v500_v36 = vadd.f32 %v713_v35, %v679_v30  ;;  %511 = sbr.rel (!%p857_p6) target bundleno = 282 (0x11a), region = 85 }
 0x10e   : > { %v463_v37 = vpop.f32.mrf.mxu0 }
 0x10f   : > { %504 = vst [vmem:[%s328_s27 + $0x18] sm:$0xff] %v500_v36  ;;  %v498_v38 = vadd.f32 %v679_v30, %v463_v37 }
 0x111   : > { %502 = vst [vmem:[%s328_s27 + $0x8] sm:$0xff] %v498_v38 }
 0x112   : > { %v555_v41 = vld [vmem:[%s328_s27 + $0x10] sm:$0xff] }
 0x113   : > { %556 = vst [vmem:[%s516_s30 + $0x30] sm:$0xff] %v555_v41 }
 0x114   : > { %v551_v39 = vld [vmem:[%s328_s27] sm:$0xff] }
 0x115   : > { %552 = vst [vmem:[%s516_s30] sm:$0xff] %v551_v39 }
 0x116   : > { %v557_v42 = vld [vmem:[%s328_s27 + $0x18] sm:$0xff] }
 0x117   : > { %558 = vst [vmem:[%s516_s30 + $0x48] sm:$0xff] %v557_v42 }
 0x118   : > { %v553_v40 = vld [vmem:[%s328_s27 + $0x8] sm:$0xff] }
 0x119   : > { %554 = vst [vmem:[%s516_s30 + $0x18] sm:$0xff] %v553_v40 }
 0x11a PF: > { %s13_s16 = sadd.s32 1, %s800_s16   ;;  %s938_s12 = smov %s788_s13 }
 0x11b   : > { %p10_p12 = scmp.ge.s32.totalorder %s13_s16, 5   ;;  %s939_s13 = smov %s862_s22 }
 0x11c   : > { %s940_s14 = smov %s796_s15  ;;  %s941_s15 = smov %s943_s17 }
 0x11d   :  { %12 = sbr.rel (!%p10_p12) target bundleno = 3 (0x3), region = 160 }

// kernel: transformer_forward.55
= control target key start
LH: loop header
LB: loop body
LE: loop exit
PB: predicated region body
PF: predicated region fallthrough
CT: control target
= control target key end

     0   :  { %s298_s1 = inlined_call_operand.vmem [shape: bf16[128,128], index: 1, kind: input, shape index: {}]   ;;  %s299_s0 = inlined_call_operand.vmem [shape: f32[32,128], index: 0, kind: input, shape index: {}]   ;;  %s300_s2 = inlined_call_operand.vmem [shape: f32[1,128], index: 2, kind: input, shape index: {}]   ;;  %s301_s3 = inlined_call_operand.vmem [shape: f32[32,128], index: 3, kind: output, shape index: {}]  }
   0x1   :  { %v219_v0 = vld [vmem:[%s298_s1 + $0x38] sm:$0xff]   ;;  %v220_v1 = vld [vmem:[%s298_s1 + $0x30] sm:$0xff]   ;;  %v221_v2 = vld [vmem:[%s298_s1 + $0x28] sm:$0xff]  }
   0x2   :  { %199 = vmatprep.subr.bf16.mxu0 %v219_v0  ;;  %v222_v3 = vld [vmem:[%s298_s1 + $0x20] sm:$0xff]   ;;  %v28_v5 = vld [vmem:[%s299_s0 + $0x8] sm:$0xff]  ;;  %v223_v7 = vld [vmem:[%s298_s1 + $0x18] sm:$0xff]  }
   0x3   :  { %200 = vmatpush3.bf16.msra.mxu0 %v219_v0  ;;  %v27_v4 = vld [vmem:[%s299_s0] sm:$0xff]  ;;  %v224_v8 = vld [vmem:[%s298_s1 + $0x10] sm:$0xff]   ;;  %v225_v9 = vld [vmem:[%s298_s1 + $0x8] sm:$0xff]  }
   0x4   :  { %201 = vmatprep.subr.bf16.mxu0 %v220_v1  ;;  %v31_v6 = vpack.c.bf16 %v28_v5, %v27_v4  ;;  %v226_v10 = vld [vmem:[%s298_s1] sm:$0xff]   ;;  %v29_v11 = vld [vmem:[%s299_s0 + $0x10] sm:$0xff]  ;;  %v30_v12 = vld [vmem:[%s299_s0 + $0x18] sm:$0xff] }
   0x5   :  { %v32_v13 = vpack.c.bf16 %v30_v12, %v29_v11  ;;  %v188_v14 = vld [vmem:[%s300_s2] ss:$0 sm:$0xff] }
   0x6   :  { %215 = vmatprep.mubr.bf16.mxu0 %v31_v6 }
   0x7   :  { %202 = vmatpush3.bf16.msra.mxu0 %v220_v1 }
   0x8   :  { %203 = vmatprep.subr.bf16.mxu0 %v221_v2 }
   0xb   :  { %204 = vmatpush3.bf16.msra.mxu0 %v221_v2 }
   0xc   :  { %205 = vmatprep.subr.bf16.mxu0 %v222_v3 }
   0xf   :  { %206 = vmatpush3.bf16.msra.mxu0 %v222_v3 }
  0x10   :  { %207 = vmatprep.subr.bf16.mxu0 %v223_v7 }
  0x13   :  { %208 = vmatpush3.bf16.msra.mxu0 %v223_v7 }
  0x14   :  { %209 = vmatprep.subr.bf16.mxu0 %v224_v8 }
  0x17   :  { %210 = vmatpush3.bf16.msra.mxu0 %v224_v8 }
  0x18   :  { %211 = vmatprep.subr.bf16.mxu0 %v225_v9 }
  0x1b   :  { %212 = vmatpush3.bf16.msra.mxu0 %v225_v9 }
  0x1c   :  { %213 = vmatprep.subr.bf16.mxu0 %v226_v10 }
  0x1f   :  { %214 = vmatpush3.bf16.msra.mxu0 %v226_v10 }
  0x22   :  { %216 = vmatmul.mubr.bf16.vlgmr.msra.gmra.mxu0 %v32_v13 }
  0xe2   :  { %v217_v15 = vpop.f32.mrf.mxu0 }
  0xe3   :  { %v170_v16 = vadd.f32 %v217_v15, %v188_v14 }
  0xe4   :  { %v131_v17 = vpop.f32.mrf.mxu0 }
  0xe5   :  { %174 = vst [vmem:[%s301_s3 + $0x10] sm:$0xff] %v170_v16  ;;  %v168_v18 = vadd.f32 %v188_v14, %v131_v17 }
  0xe6   :  { %v218_v19 = vpop.f32.mrf.mxu0 }
  0xe7   :  { %172 = vst [vmem:[%s301_s3] sm:$0xff] %v168_v18  ;;  %v171_v20 = vadd.f32 %v218_v19, %v188_v14 }
  0xe8   :  { %v134_v21 = vpop.f32.mrf.mxu0 }
  0xe9   :  { %175 = vst [vmem:[%s301_s3 + $0x18] sm:$0xff] %v171_v20  ;;  %v169_v22 = vadd.f32 %v188_v14, %v134_v21 }
  0xeb   :  { %173 = vst [vmem:[%s301_s3 + $0x8] sm:$0xff] %v169_v22 }

// kernel: transformer_forward.54
= control target key start
LH: loop header
LB: loop body
LE: loop exit
PB: predicated region body
PF: predicated region fallthrough
CT: control target
= control target key end

     0   :  { %s1410_s15 = smov 0   ;;  %s1591_s0 = inlined_call_operand.vmem [shape: f32[2,16,128], index: 0, kind: input, shape index: {}]   ;;  %s1592_s1 = inlined_call_operand.vmem [shape: f32[2,16,128], index: 1, kind: input, shape index: {}]   ;;  %s1593_s2 = inlined_call_operand.vmem [shape: f32[2,16,128], index: 2, kind: input, shape index: {}]   ;;  %s1594_s3 = inlined_call_operand.vmem [shape: s32[2,16,16], index: 3, kind: input, shape index: {}]   ;;  %s1595_s4 = inlined_call_operand.vmem [shape: f32[2,16,128], index: 4, kind: output, shape index: {}]  }
   0x1 LB: > { %s1197_s16 = sadd.s32 4294967295, %s1380_s15   ;;  %p1201_p0 = scmp.ge.s32.totalorder %s1380_s15, 1  ;;  %s1380_s15 = sphi %s1410_s15, %s14_s15  }
   0x2   : > { %p192_p1 = scmp.lt.s32.totalorder %s1380_s15, 3 }
   0x4   : > { %p193_p2 = pnand %p1201_p0, %p192_p1 }
   0x5   : > { %p233_p3 = scmp.lt.s32.totalorder (!%p193_p2), %s1197_s16, 1  ;;  %s1382_s24 = smov (!%p193_p2), 96  }
   0x6   : > { %196 = sbr.rel (%p193_p2) target bundleno = 2409 (0x969), region = 36  ;;  %s1383_s5 = smov (!%p193_p2), 64  }
   0x7   : > { %s1384_s6 = smov (!%p193_p2), 32  }
   0xb   : > { %s1597_s16 = smov (!%p233_p3, %s1197_s16), 1  ;;  %vm270_vm0 = vcmask 261120   ;;  %vm360_vm3 = vcmask 130048   ;;  %vm1098_vm4 = vcmask 523264   ;;  %vm1101_vm5 = vcmask 785408  }
   0xc   : > { %s1418_s17 = sshll.u32 %s1597_s16, 4 }
   0xd   : > { %s242_s20 = scalar_lea.vmem %s1592_s1, %s1418_s17  ;;  %s237_s23 = scalar_lea.vmem %s1591_s0, %s1418_s17 }
   0xe   : > { %v1428_v0 = vld [vmem:[%s242_s20 + $0x8] sm:$0xff]  ;;  %v1430_v1 = vld [vmem:[%s242_s20] sm:$0xff]  ;;  %s252_s27 = scalar_lea.vmem %s1594_s3, %s1418_s17  ;;  %s247_s30 = scalar_lea.vmem %s1593_s2, %s1418_s17 }
   0xf   : > { %v258_v2 = vld [vmem:[%s237_s23] sm:$0xff]  ;;  %1275 = vmatprep.subr.msk.mxu0 %vm270_vm0, %v1428_v0  ;;  %v259_v4 = vld [vmem:[%s237_s23 + $0x8] sm:$0xff]  ;;  %468 = vrot.lane.b32.xlu1 %v1430_v1, %s1382_s24  ;;  %s257_s9 = scalar_lea.vmem %s1595_s4, %s1418_s17 }
  0x10   : > { %v1434_v3 = vmul.f32 0.17677669, %v258_v2  ;;  %1276 = vmatpush3.xpose.msk.msra.mxu0 %vm270_vm0, %v1428_v0  ;;  %v1442_v5 = vmul.f32 0.17677669, %v259_v4  ;;  %v1456_v6 = vld [vmem:[%s252_s27] sm:$0xff]  ;;  %v1458_v7 = vld [vmem:[%s252_s27 + $0x8] sm:$0xff] }
  0x11   : > { %1277 = vmatprep.subr.msk.mxu0 %vm270_vm0, %v1430_v1  ;;  %vm268_vm1 = vcmp.eq.s32.totalorder %v1456_v6, 0  ;;  %vm269_vm2 = vcmp.eq.s32.totalorder %v1458_v7, 0  ;;  %v1476_v24 = vld [vmem:[%s247_s30 + $0x8] sm:$0xff]  ;;  %v1478_v25 = vld [vmem:[%s247_s30] sm:$0xff] }
  0x12   : > { %1279 = vmatprep.mubr.msk.f32.mxu0 %vm270_vm0, %v1434_v3  ;;  %1282 = vmatprep.subr.mxu1 %v1476_v24 }
  0x13   : > { %464 = vrot.lane.b32.xlu1 %v1434_v3, %s1382_s24  ;;  %1283 = vmatpush3.msra.mxu1 %v1476_v24 }
  0x14   : > { %1278 = vmatpush3.xpose.msk.msra.mxu0 %vm270_vm0, %v1430_v1  ;;  %1284 = vmatprep.subr.mxu1 %v1478_v25 }
  0x15   : > { %1285 = vmatpush3.msra.mxu1 %v1478_v25 }
  0x17   : > { %1280 = vmatmul.mubr.msk.f32.vlgmr.msra.gmra.mxu0 %vm270_vm0, %v1442_v5 }
  0x81   : > { %v469_v27 = vpop.permute.xlu1 %468 }
  0x85   : > { %v465_v28 = vpop.permute.xlu1 %464 }
  0xd7   : > { %v1281_v8 = vpop.f32.mrf.mxu0 }
  0xd8   : > { %v359_v12 = vsel %vm269_vm2, -1e+09, %v1281_v8 }
  0xd9   : > { %v349_v9 = vpop.f32.mrf.mxu0  ;;  %v364_v13 = vsel %vm360_vm3, %v359_v12, -inf }
  0xda   : > { %v358_v10 = vsel %vm268_vm1, -1e+09, %v349_v9 }
  0xdb   : > { %v361_v11 = vsel %vm360_vm3, %v358_v10, -inf }
  0xdc   : > { %362 = vmax.xlane.f32.xlu0 %v361_v11 }
  0xe0   : > { %365 = vmax.xlane.f32.xlu0 %v364_v13 }
  0xf6   : > { %470 = vrot.lane.b32.xlu0 %v1428_v0, %s1382_s24 }
 0x165   : > { %v363_v14 = vpop.xlane.xlu0 %362 }
 0x166   : > { %v367_v15 = vsub.f32 %v358_v10, %v363_v14 }
 0x168   : > { %v369_v18 = vmul.f32 1.442695, %v367_v15 }
 0x169   : > { %v366_v16 = vpop.xlane.xlu0 %365 }
 0x16a   : > { %v368_v17 = vsub.f32 %v359_v12, %v366_v16 }
 0x16c   : > { %v371_v19 = vmul.f32 1.442695, %v368_v17 }
 0x16d   : > { %v471_v26 = vpop.permute.xlu0 %470 }
 0x16e   : > { %1342 = vpow2.f32 %v371_v19  ;;  %1289 = vmatprep.subr.msk.mxu1 %vm270_vm0, %v471_v26 }
 0x16f   : > { %1344 = vpow2.f32 %v369_v18 }
 0x17b   : > { %v1343_v20 = vpop.eup %1342 }
 0x17c   : > { %v376_v21 = vsel %vm360_vm3, %v1343_v20, 0.0  ;;  %v1345_v22 = vpop.eup %1344 }
 0x17d   : > { %377 = vadd.xlane.f32.xlu1 %v376_v21  ;;  %v373_v23 = vsel %vm360_vm3, %v1345_v22, 0.0 }
 0x181   : > { %374 = vadd.xlane.f32.xlu1 %v373_v23 }
 0x192   : > { %466 = vrot.lane.b32.xlu1 %v1442_v5, %s1382_s24 }
 0x206   : > { %v378_v29 = vpop.xlane.xlu1 %377 }
 0x207   : > { %1346 = vrcp.f32 %v378_v29 }
 0x20a   : > { %v375_v30 = vpop.xlane.xlu1 %374 }
 0x20b   : > { %1348 = vrcp.f32 %v375_v30 }
 0x20e   : > { %v467_v35 = vpop.permute.xlu1 %466 }
 0x214   : > { %v1347_v31 = vpop.eup %1346 }
 0x215   : > { %v382_v34 = vmul.f32 %v1347_v31, %v1343_v20 }
 0x218   : > { %v1349_v32 = vpop.eup %1348 }
 0x219   : > { %v381_v33 = vmul.f32 %v1349_v32, %v1345_v22 }
 0x21b   : > { %1286 = vmatprep.mubr.msk.f32.mxu1 %vm360_vm3, %v381_v33 }
 0x21c   : > { %1287 = vmatmul.mubr.msk.f32.vlgmr.msra.gmra.mxu1 %vm360_vm3, %v382_v34 }
 0x21d   : > { %1290 = vmatpush3.xpose.msk.msra.mxu1 %vm270_vm0, %v471_v26  ;;  %1293 = vmatprep.mubr.msk.f32.mxu1 %vm270_vm0, %v465_v28 }
 0x21e   : > { %1291 = vmatprep.subr.msk.mxu1 %vm270_vm0, %v469_v27 }
 0x221   : > { %1292 = vmatpush3.xpose.msk.msra.mxu1 %vm270_vm0, %v469_v27 }
 0x224   : > { %1294 = vmatmul.mubr.msk.f32.vlgmr.msra.gmra.mxu1 %vm270_vm0, %v467_v35 }
 0x2dc   : > { %v1494_v36 = vpop.f32.mrf.mxu1 }
 0x2de   : > { %v1496_v37 = vpop.f32.mrf.mxu1 }
 0x2e4   : > { %v1295_v38 = vpop.f32.mrf.mxu1 }
 0x2e5   : > { %v556_v39 = vsel %vm269_vm2, -1e+09, %v1295_v38 }
 0x2e6   : > { %v546_v40 = vpop.f32.mrf.mxu1  ;;  %v560_v41 = vsel %vm360_vm3, %v556_v39, -inf }
 0x2e7   : > { %v555_v42 = vsel %vm268_vm1, -1e+09, %v546_v40  ;;  %561 = vmax.xlane.f32.xlu1 %v560_v41 }
 0x2e8   : > { %v557_v43 = vsel %vm360_vm3, %v555_v42, -inf }
 0x2e9   : > { %558 = vmax.xlane.f32.xlu0 %v557_v43 }
 0x2f8   : > { %581 = vrot.lane.b32.xlu1 %v1478_v25, %s1382_s24 }
 0x2fc   : > { %674 = vrot.lane.b32.xlu1 %v1428_v0, %s1383_s5 }
 0x300   : > { %672 = vrot.lane.b32.xlu1 %v1430_v1, %s1383_s5 }
 0x304   : > { %670 = vrot.lane.b32.xlu1 %v1442_v5, %s1383_s5 }
 0x370   : > { %v562_v44 = vpop.xlane.xlu1 %561 }
 0x371   : > { %v564_v45 = vsub.f32 %v556_v39, %v562_v44 }
 0x372   : > { %v559_v46 = vpop.xlane.xlu0 %558 }
 0x373   : > { %v567_v47 = vmul.f32 1.442695, %v564_v45  ;;  %v563_v48 = vsub.f32 %v555_v42, %v559_v46 }
 0x374   : > { %v582_v56 = vpop.permute.xlu1 %581 }
 0x375   : > { %1350 = vpow2.f32 %v567_v47  ;;  %v565_v49 = vmul.f32 1.442695, %v563_v48 }
 0x377   : > { %1352 = vpow2.f32 %v565_v49 }
 0x378   : > { %v675_v58 = vpop.permute.xlu1 %674 }
 0x37c   : > { %v673_v2 = vpop.permute.xlu1 %672 }
 0x380   : > { %v671_v4 = vpop.permute.xlu1 %670 }
 0x382   : > { %v1351_v50 = vpop.eup %1350 }
 0x383   : > { %v572_v51 = vsel %vm360_vm3, %v1351_v50, 0.0 }
 0x384   : > { %v1353_v52 = vpop.eup %1352  ;;  %573 = vadd.xlane.f32.xlu0 %v572_v51 }
 0x385   : > { %v569_v53 = vsel %vm360_vm3, %v1353_v52, 0.0 }
 0x388   : > { %570 = vadd.xlane.f32.xlu0 %v569_v53 }
 0x39e   : > { %583 = vrot.lane.b32.xlu0 %v1476_v24, %s1382_s24 }
 0x3a2   : > { %668 = vrot.lane.b32.xlu0 %v1434_v3, %s1383_s5 }
 0x40d   : > { %v574_v54 = vpop.xlane.xlu0 %573 }
 0x40e   : > { %1354 = vrcp.f32 %v574_v54 }
 0x411   : > { %v571_v55 = vpop.xlane.xlu0 %570 }
 0x412   : > { %1356 = vrcp.f32 %v571_v55 }
 0x415   : > { %v584_v57 = vpop.permute.xlu0 %583 }
 0x416   : > { %1296 = vmatprep.subr.mxu0 %v584_v57 }
 0x417   : > { %1297 = vmatpush3.msra.mxu0 %v584_v57 }
 0x418   : > { %1298 = vmatprep.subr.mxu0 %v582_v56 }
 0x419   : > { %1299 = vmatpush3.msra.mxu0 %v582_v56  ;;  %v669_v63 = vpop.permute.xlu0 %668 }
 0x41a   : > { %1303 = vmatprep.subr.msk.mxu0 %vm270_vm0, %v675_v58 }
 0x41b   : > { %v1355_v59 = vpop.eup %1354 }
 0x41c   : > { %v578_v62 = vmul.f32 %v1355_v59, %v1351_v50 }
 0x41f   : > { %v1357_v60 = vpop.eup %1356 }
 0x420   : > { %v577_v61 = vmul.f32 %v1357_v60, %v1353_v52 }
 0x422   : > { %1300 = vmatprep.mubr.msk.f32.mxu0 %vm360_vm3, %v577_v61 }
 0x423   : > { %1301 = vmatmul.mubr.msk.f32.vlgmr.msra.gmra.mxu0 %vm360_vm3, %v578_v62 }
 0x424   : > { %1304 = vmatpush3.xpose.msk.msra.mxu0 %vm270_vm0, %v675_v58  ;;  %1307 = vmatprep.mubr.msk.f32.mxu0 %vm270_vm0, %v669_v63 }
 0x425   : > { %1305 = vmatprep.subr.msk.mxu0 %vm270_vm0, %v673_v2 }
 0x428   : > { %1306 = vmatpush3.xpose.msk.msra.mxu0 %vm270_vm0, %v673_v2 }
 0x42b   : > { %1308 = vmatmul.mubr.msk.f32.vlgmr.msra.gmra.mxu0 %vm270_vm0, %v671_v4 }
 0x4e3   : > { %v1526_v8 = vpop.f32.mrf.mxu0 }
 0x4e5   : > { %v1528_v9 = vpop.f32.mrf.mxu0 }
 0x4eb   : > { %v1309_v10 = vpop.f32.mrf.mxu0 }
 0x4ec   : > { %v760_v11 = vsel %vm269_vm2, -1e+09, %v1309_v10 }
 0x4ed   : > { %v750_v12 = vpop.f32.mrf.mxu0  ;;  %v764_v13 = vsel %vm360_vm3, %v760_v11, -inf }
 0x4ee   : > { %v759_v14 = vsel %vm268_vm1, -1e+09, %v750_v12  ;;  %765 = vmax.xlane.f32.xlu1 %v764_v13 }
 0x4ef   : > { %v761_v15 = vsel %vm360_vm3, %v759_v14, -inf }
 0x4f0   : > { %762 = vmax.xlane.f32.xlu0 %v761_v15 }
 0x4ff   : > { %783 = vrot.lane.b32.xlu1 %v1478_v25, %s1383_s5 }
 0x503   : > { %876 = vrot.lane.b32.xlu1 %v1428_v0, %s1384_s6 }
 0x507   : > { %874 = vrot.lane.b32.xlu1 %v1430_v1, %s1384_s6 }
 0x50b   : > { %872 = vrot.lane.b32.xlu1 %v1442_v5, %s1384_s6 }
 0x577   : > { %v766_v16 = vpop.xlane.xlu1 %765 }
 0x578   : > { %v768_v17 = vsub.f32 %v760_v11, %v766_v16 }
 0x579   : > { %v763_v18 = vpop.xlane.xlu0 %762 }
 0x57a   : > { %v771_v19 = vmul.f32 1.442695, %v768_v17  ;;  %v767_v20 = vsub.f32 %v759_v14, %v763_v18 }
 0x57b   : > { %v784_v27 = vpop.permute.xlu1 %783 }
 0x57c   : > { %1358 = vpow2.f32 %v771_v19  ;;  %v769_v21 = vmul.f32 1.442695, %v767_v20 }
 0x57e   : > { %1360 = vpow2.f32 %v769_v21 }
 0x57f   : > { %v877_v29 = vpop.permute.xlu1 %876 }
 0x589   : > { %v1359_v22 = vpop.eup %1358 }
 0x58a   : > { %v776_v23 = vsel %vm360_vm3, %v1359_v22, 0.0 }
 0x58b   : > { %v1361_v26 = vpop.eup %1360  ;;  %777 = vadd.xlane.f32.xlu0 %v776_v23 }
 0x58c   : > { %v773_v0 = vsel %vm360_vm3, %v1361_v26, 0.0 }
 0x58f   : > { %774 = vadd.xlane.f32.xlu0 %v773_v0 }
 0x5a5   : > { %785 = vrot.lane.b32.xlu0 %v1476_v24, %s1383_s5 }
 0x5a9   : > { %870 = vrot.lane.b32.xlu0 %v1434_v3, %s1384_s6  ;;  %v875_v3 = vpop.permute.xlu1 %874 }
 0x5ad   : > { %v873_v35 = vpop.permute.xlu1 %872 }
 0x614   : > { %v778_v1 = vpop.xlane.xlu0 %777 }
 0x615   : > { %1362 = vrcp.f32 %v778_v1 }
 0x618   : > { %v775_v5 = vpop.xlane.xlu0 %774 }
 0x619   : > { %1364 = vrcp.f32 %v775_v5 }
 0x61c   : > { %v786_v28 = vpop.permute.xlu0 %785 }
 0x61d   : > { %1310 = vmatprep.subr.mxu1 %v786_v28 }
 0x61e   : > { %1311 = vmatpush3.msra.mxu1 %v786_v28 }
 0x61f   : > { %1312 = vmatprep.subr.mxu1 %v784_v27 }
 0x620   : > { %1313 = vmatpush3.msra.mxu1 %v784_v27  ;;  %v871_v34 = vpop.permute.xlu0 %870 }
 0x621   : > { %1317 = vmatprep.subr.msk.mxu1 %vm270_vm0, %v877_v29 }
 0x622   : > { %v1363_v30 = vpop.eup %1362 }
 0x623   : > { %v782_v33 = vmul.f32 %v1363_v30, %v1359_v22 }
 0x626   : > { %v1365_v31 = vpop.eup %1364 }
 0x627   : > { %v781_v32 = vmul.f32 %v1365_v31, %v1361_v26 }
 0x629   : > { %1314 = vmatprep.mubr.msk.f32.mxu1 %vm360_vm3, %v781_v32 }
 0x62a   : > { %1315 = vmatmul.mubr.msk.f32.vlgmr.msra.gmra.mxu1 %vm360_vm3, %v782_v33 }
 0x62b   : > { %1318 = vmatpush3.xpose.msk.msra.mxu1 %vm270_vm0, %v877_v29  ;;  %1321 = vmatprep.mubr.msk.f32.mxu1 %vm270_vm0, %v871_v34 }
 0x62c   : > { %1319 = vmatprep.subr.msk.mxu1 %vm270_vm0, %v875_v3 }
 0x62f   : > { %1320 = vmatpush3.xpose.msk.msra.mxu1 %vm270_vm0, %v875_v3 }
 0x632   : > { %1322 = vmatmul.mubr.msk.f32.vlgmr.msra.gmra.mxu1 %vm270_vm0, %v873_v35 }
 0x6ea   : > { %v1316_v38 = vpop.f32.mrf.mxu1 }
 0x6ec   : > { %v861_v39 = vpop.f32.mrf.mxu1 }
 0x6f2   : > { %v1323_v40 = vpop.f32.mrf.mxu1 }
 0x6f3   : > { %v962_v41 = vsel %vm269_vm2, -1e+09, %v1323_v40 }
 0x6f4   : > { %v952_v42 = vpop.f32.mrf.mxu1  ;;  %v966_v43 = vsel %vm360_vm3, %v962_v41, -inf }
 0x6f5   : > { %v961_v44 = vsel %vm268_vm1, -1e+09, %v952_v42  ;;  %967 = vmax.xlane.f32.xlu1 %v966_v43 }
 0x6f6   : > { %v963_v45 = vsel %vm360_vm3, %v961_v44, -inf }
 0x6f7   : > { %964 = vmax.xlane.f32.xlu0 %v963_v45 }
 0x706   : > { %985 = vrot.lane.b32.xlu1 %v1478_v25, %s1384_s6 }
 0x70a   : > { %1074 = vrot.lane.b32.xlu1 %v1528_v9, %s1384_s6 }
 0x70e   : > { %1076 = vrot.lane.b32.xlu1 %v1526_v8, %s1384_s6 }
 0x712   : > { %1084 = vrot.lane.b32.xlu1 %v1316_v38, %s1383_s5 }
 0x77e   : > { %v968_v7 = vpop.xlane.xlu1 %967 }
 0x77f   : > { %v970_v46 = vsub.f32 %v962_v41, %v968_v7 }
 0x780   : > { %v965_v47 = vpop.xlane.xlu0 %964 }
 0x781   : > { %v973_v6 = vmul.f32 1.442695, %v970_v46  ;;  %v969_v48 = vsub.f32 %v961_v44, %v965_v47 }
 0x782   : > { %v986_v56 = vpop.permute.xlu1 %985 }
 0x783   : > { %1366 = vpow2.f32 %v973_v6  ;;  %v971_v49 = vmul.f32 1.442695, %v969_v48 }
 0x785   : > { %1368 = vpow2.f32 %v971_v49 }
 0x786   : > { %v1075_v62 = vpop.permute.xlu1 %1074 }
 0x787   : > { %v1096_v11 = vsel %vm270_vm0, %v1496_v37, %v1075_v62 }
 0x78a   : > { %v1077_v63 = vpop.permute.xlu1 %1076 }
 0x78b   : > { %v1097_v8 = vsel %vm270_vm0, %v1494_v36, %v1077_v63 }
 0x78e   : > { %v1085_v2 = vpop.permute.xlu1 %1084 }
 0x78f   : > { %v1100_v9 = vsel %vm1098_vm4, %v1097_v8, %v1085_v2 }
 0x790   : > { %v1367_v50 = vpop.eup %1366 }
 0x791   : > { %v978_v51 = vsel %vm360_vm3, %v1367_v50, 0.0 }
 0x792   : > { %v1369_v25 = vpop.eup %1368  ;;  %979 = vadd.xlane.f32.xlu0 %v978_v51 }
 0x793   : > { %v975_v52 = vsel %vm360_vm3, %v1369_v25, 0.0 }
 0x796   : > { %976 = vadd.xlane.f32.xlu0 %v975_v52 }
 0x7ac   : > { %987 = vrot.lane.b32.xlu0 %v1476_v24, %s1384_s6 }
 0x7b0   : > { %1082 = vrot.lane.b32.xlu0 %v861_v39, %s1383_s5 }
 0x81b   : > { %v980_v53 = vpop.xlane.xlu0 %979 }
 0x81c   : > { %1370 = vrcp.f32 %v980_v53 }
 0x81f   : > { %v977_v54 = vpop.xlane.xlu0 %976 }
 0x820   : > { %1372 = vrcp.f32 %v977_v54 }
 0x823   : > { %v988_v55 = vpop.permute.xlu0 %987 }
 0x824   : > { %1324 = vmatprep.subr.mxu0 %v988_v55 }
 0x825   : > { %1325 = vmatpush3.msra.mxu0 %v988_v55 }
 0x826   : > { %1326 = vmatprep.subr.mxu0 %v986_v56 }
 0x827   : > { %1327 = vmatpush3.msra.mxu0 %v986_v56  ;;  %v1083_v4 = vpop.permute.xlu0 %1082 }
 0x828   : > { %v1099_v13 = vsel %vm1098_vm4, %v1096_v11, %v1083_v4 }
 0x829   : > { %v1371_v57 = vpop.eup %1370 }
 0x82a   : > { %v984_v60 = vmul.f32 %v1371_v57, %v1367_v50 }
 0x82d   : > { %v1373_v58 = vpop.eup %1372 }
 0x82e   : > { %v983_v59 = vmul.f32 %v1373_v58, %v1369_v25 }
 0x830   : > { %1328 = vmatprep.mubr.msk.f32.mxu0 %vm360_vm3, %v983_v59 }
 0x831   : > { %1329 = vmatmul.mubr.msk.f32.vlgmr.msra.gmra.mxu0 %vm360_vm3, %v984_v60 }
 0x8f1   : > { %v1330_v24 = vpop.f32.mrf.mxu0 }
 0x8f2   : > { %1092 = vrot.lane.b32.xlu1 %v1330_v24, %s1382_s24 }
 0x8f3   : > { %v1063_v61 = vpop.f32.mrf.mxu0 }
 0x8f4   : > { %1090 = vrot.lane.b32.xlu0 %v1063_v61, %s1382_s24 }
 0x964   : > { %v1093_v10 = vpop.permute.xlu1 %1092 }
 0x965   : > { %v1103_v12 = vsel %vm1101_vm5, %v1100_v9, %v1093_v10 }
 0x966   : > { %1105 = vst [vmem:[%s257_s9 + $0x8] sm:$0xff] %v1103_v12  ;;  %v1091_v14 = vpop.permute.xlu0 %1090 }
 0x967   : > { %v1102_v15 = vsel %vm1101_vm5, %v1099_v13, %v1091_v14 }
 0x968   : > { %1104 = vst [vmem:[%s257_s9] sm:$0xff] %v1102_v15 }
 0x969 PF: > { %s14_s15 = sadd.s32 1, %s1380_s15  }
 0x96a   : > { %p11_p4 = scmp.ge.s32.totalorder %s14_s15, 4  }
 0x96c   :  { %13 = sbr.rel (!%p11_p4) target bundleno = 1 (0x1), region = 75 }

// kernel: transformer_forward.44
= control target key start
LH: loop header
LB: loop body
LE: loop exit
PB: predicated region body
PF: predicated region fallthrough
CT: control target
= control target key end

     0   :  { %s434_s1 = inlined_call_operand.vmem [shape: bf16[256,128], index: 1, kind: input, shape index: {}]   ;;  %s435_s0 = inlined_call_operand.vmem [shape: f32[32,256], index: 0, kind: input, shape index: {}]   ;;  %s436_s2 = inlined_call_operand.vmem [shape: f32[1,128], index: 2, kind: input, shape index: {}]   ;;  %s437_s3 = inlined_call_operand.vmem [shape: f32[32,128], index: 3, kind: output, shape index: {}]  }
   0x1   :  { %v311_v0 = vld [vmem:[%s434_s1 + $0x78] sm:$0xff]   ;;  %v313_v2 = vld [vmem:[%s434_s1 + $0x70] sm:$0xff]   ;;  %v315_v4 = vld [vmem:[%s434_s1 + $0x68] sm:$0xff]  }
   0x2   :  { %v312_v1 = vld [vmem:[%s434_s1 + $0x38] sm:$0xff]   ;;  %267 = vmatprep.subr.bf16.mxu0 %v311_v0  ;;  %295 = vmatprep.subr.bf16.mxu1 %v311_v0  ;;  %v314_v3 = vld [vmem:[%s434_s1 + $0x30] sm:$0xff]   ;;  %v316_v5 = vld [vmem:[%s434_s1 + $0x28] sm:$0xff]  }
   0x3   :  { %268 = vmatpush3.bf16.msra.mxu0 %v312_v1  ;;  %303 = vmatpush3.bf16.msra.mxu1 %v312_v1  ;;  %v317_v6 = vld [vmem:[%s434_s1 + $0x60] sm:$0xff]   ;;  %v319_v8 = vld [vmem:[%s434_s1 + $0x58] sm:$0xff]   ;;  %v321_v10 = vld [vmem:[%s434_s1 + $0x50] sm:$0xff]  }
   0x4   :  { %269 = vmatprep.subr.bf16.mxu0 %v313_v2  ;;  %296 = vmatprep.subr.bf16.mxu1 %v313_v2  ;;  %v318_v7 = vld [vmem:[%s434_s1 + $0x20] sm:$0xff]   ;;  %v320_v9 = vld [vmem:[%s434_s1 + $0x18] sm:$0xff]   ;;  %v28_v11 = vld [vmem:[%s435_s0 + $0x8] sm:$0xff] }
   0x5   :  { %v30_v12 = vld [vmem:[%s435_s0 + $0x18] sm:$0xff]  ;;  %v32_v13 = vld [vmem:[%s435_s0 + $0x28] sm:$0xff]  ;;  %v322_v17 = vld [vmem:[%s434_s1 + $0x10] sm:$0xff]  }
   0x6   :  { %v36_v14 = vpack.c.bf16 %v30_v12, %v28_v11  ;;  %v34_v15 = vld [vmem:[%s435_s0 + $0x38] sm:$0xff]  ;;  %v323_v18 = vld [vmem:[%s434_s1 + $0x48] sm:$0xff]   ;;  %v325_v20 = vld [vmem:[%s434_s1 + $0x40] sm:$0xff]  }
   0x7   :  { %270 = vmatpush3.bf16.msra.mxu0 %v314_v3  ;;  %304 = vmatpush3.bf16.msra.mxu1 %v314_v3  ;;  %v38_v16 = vpack.c.bf16 %v34_v15, %v32_v13  ;;  %v324_v19 = vld [vmem:[%s434_s1 + $0x8] sm:$0xff]   ;;  %v326_v21 = vld [vmem:[%s434_s1] sm:$0xff]   ;;  %v29_v23 = vld [vmem:[%s435_s0 + $0x10] sm:$0xff] }
   0x8   :  { %271 = vmatprep.subr.bf16.mxu0 %v315_v4  ;;  %297 = vmatprep.subr.bf16.mxu1 %v315_v4  ;;  %v27_v22 = vld [vmem:[%s435_s0] sm:$0xff]  ;;  %v33_v25 = vld [vmem:[%s435_s0 + $0x30] sm:$0xff] }
   0x9   :  { %199 = vmatprep.mubr.bf16.mxu0 %v36_v14  ;;  %207 = vmatprep.mubr.bf16.mxu1 %v38_v16  ;;  %v31_v24 = vld [vmem:[%s435_s0 + $0x20] sm:$0xff]  ;;  %v35_v26 = vpack.c.bf16 %v29_v23, %v27_v22 }
   0xa   :  { %v37_v27 = vpack.c.bf16 %v33_v25, %v31_v24  ;;  %v266_v31 = vld [vmem:[%s436_s2] ss:$0 sm:$0xff] }
   0xb   :  { %272 = vmatpush3.bf16.msra.mxu0 %v316_v5  ;;  %305 = vmatpush3.bf16.msra.mxu1 %v316_v5 }
   0xc   :  { %273 = vmatprep.subr.bf16.mxu0 %v317_v6  ;;  %298 = vmatprep.subr.bf16.mxu1 %v317_v6 }
   0xf   :  { %274 = vmatpush3.bf16.msra.mxu0 %v318_v7  ;;  %306 = vmatpush3.bf16.msra.mxu1 %v318_v7 }
  0x10   :  { %275 = vmatprep.subr.bf16.mxu0 %v319_v8  ;;  %299 = vmatprep.subr.bf16.mxu1 %v319_v8 }
  0x13   :  { %276 = vmatpush3.bf16.msra.mxu0 %v320_v9  ;;  %307 = vmatpush3.bf16.msra.mxu1 %v320_v9 }
  0x14   :  { %277 = vmatprep.subr.bf16.mxu0 %v321_v10  ;;  %300 = vmatprep.subr.bf16.mxu1 %v321_v10 }
  0x17   :  { %278 = vmatpush3.bf16.msra.mxu0 %v322_v17  ;;  %308 = vmatpush3.bf16.msra.mxu1 %v322_v17 }
  0x18   :  { %279 = vmatprep.subr.bf16.mxu0 %v323_v18  ;;  %301 = vmatprep.subr.bf16.mxu1 %v323_v18 }
  0x1b   :  { %280 = vmatpush3.bf16.msra.mxu0 %v324_v19  ;;  %309 = vmatpush3.bf16.msra.mxu1 %v324_v19 }
  0x1c   :  { %281 = vmatprep.subr.bf16.mxu0 %v325_v20  ;;  %302 = vmatprep.subr.bf16.mxu1 %v325_v20 }
  0x1f   :  { %282 = vmatpush3.bf16.msra.mxu0 %v326_v21  ;;  %310 = vmatpush3.bf16.msra.mxu1 %v326_v21 }
  0x22   :  { %200 = vmatmul.mubr.bf16.vlgmr.msra.gmra.mxu0 %v35_v26  ;;  %208 = vmatmul.mubr.bf16.vlgmr.msra.gmra.mxu1 %v37_v27 }
  0xe2   :  { %v283_v28 = vpop.f32.mrf.mxu0  ;;  %v289_v29 = vpop.f32.mrf.mxu1 }
  0xe4   :  { %v284_v30 = vpop.f32.mrf.mxu0  ;;  %v290_v32 = vpop.f32.mrf.mxu1 }
  0xe5   :  { %v285_v33 = vadd.f32 %v284_v30, %v283_v28  ;;  %v291_v34 = vadd.f32 %v290_v32, %v289_v29 }
  0xe6   :  { %v286_v35 = vpop.f32.mrf.mxu0  ;;  %v292_v36 = vpop.f32.mrf.mxu1 }
  0xe7   :  { %v238_v37 = vadd.f32 %v285_v33, %v266_v31  ;;  %v240_v38 = vadd.f32 %v291_v34, %v266_v31 }
  0xe8   :  { %v287_v39 = vpop.f32.mrf.mxu0  ;;  %v293_v40 = vpop.f32.mrf.mxu1 }
  0xe9   :  { %242 = vst [vmem:[%s437_s3] sm:$0xff] %v238_v37  ;;  %244 = vst [vmem:[%s437_s3 + $0x10] sm:$0xff] %v240_v38  ;;  %v288_v41 = vadd.f32 %v287_v39, %v286_v35  ;;  %v294_v42 = vadd.f32 %v293_v40, %v292_v36 }
  0xeb   :  { %v239_v43 = vadd.f32 %v288_v41, %v266_v31  ;;  %v241_v44 = vadd.f32 %v294_v42, %v266_v31 }
  0xed   :  { %243 = vst [vmem:[%s437_s3 + $0x8] sm:$0xff] %v239_v43  ;;  %245 = vst [vmem:[%s437_s3 + $0x18] sm:$0xff] %v241_v44 }

// kernel: transformer_forward.43
= control target key start
LH: loop header
LB: loop body
LE: loop exit
PB: predicated region body
PF: predicated region fallthrough
CT: control target
= control target key end

     0   :  { %v314_v1 = vmov 0   ;;  %v219_v23 = vlaneseq  ;;  %s422_s1 = inlined_call_operand.vmem [shape: bf16[128,256], index: 1, kind: input, shape index: {}]   ;;  %s423_s0 = inlined_call_operand.vmem [shape: f32[32,128], index: 0, kind: input, shape index: {}]   ;;  %s424_s2 = inlined_call_operand.vmem [shape: f32[1,256], index: 2, kind: input, shape index: {}]   ;;  %s425_s3 = inlined_call_operand.vmem [shape: f32[32,256], index: 3, kind: output, shape index: {}]  }
   0x1   :  { %v290_v0 = vld [vmem:[%s422_s1 + $0x74] ss:$8 sps:$4 sm:$0xff]   ;;  %169 = vmatprep.mubr.bf16.mxu0 %v314_v1  ;;  %179 = vmatprep.mubr.bf16.mxu1 %v314_v1  ;;  %v292_v2 = vld [vmem:[%s422_s1 + $0x70] ss:$8 sps:$4 sm:$0xff]   ;;  %v293_v3 = vld [vmem:[%s422_s1 + $0x64] ss:$8 sps:$4 sm:$0xff]  }
   0x2   :  { %137 = vmatprep.subr.bf16.mxu0 %v290_v0  ;;  %273 = vmatprep.subr.bf16.mxu1 %v290_v0  ;;  %v295_v4 = vld [vmem:[%s422_s1 + $0x60] ss:$8 sps:$4 sm:$0xff]   ;;  %v296_v5 = vld [vmem:[%s422_s1 + $0x54] ss:$8 sps:$4 sm:$0xff]   ;;  %v298_v6 = vld [vmem:[%s422_s1 + $0x50] ss:$8 sps:$4 sm:$0xff]  }
   0x3   :  { %138 = vmatpush1.bf16.msra.mxu0 %v292_v2  ;;  %281 = vmatpush1.bf16.msra.mxu1 %v292_v2  ;;  %v299_v7 = vld [vmem:[%s422_s1 + $0x44] ss:$8 sps:$4 sm:$0xff]   ;;  %v301_v8 = vld [vmem:[%s422_s1 + $0x40] ss:$8 sps:$4 sm:$0xff]   ;;  %v302_v9 = vld [vmem:[%s422_s1 + $0x34] ss:$8 sps:$4 sm:$0xff]  }
   0x4   :  { %139 = vmatprep.subr.bf16.mxu0 %v293_v3  ;;  %274 = vmatprep.subr.bf16.mxu1 %v293_v3  ;;  %v304_v10 = vld [vmem:[%s422_s1 + $0x30] ss:$8 sps:$4 sm:$0xff]   ;;  %v305_v11 = vld [vmem:[%s422_s1 + $0x24] ss:$8 sps:$4 sm:$0xff]   ;;  %v307_v12 = vld [vmem:[%s422_s1 + $0x20] ss:$8 sps:$4 sm:$0xff]  }
   0x5   :  { %v308_v13 = vld [vmem:[%s422_s1 + $0x14] ss:$8 sps:$4 sm:$0xff]   ;;  %v310_v14 = vld [vmem:[%s422_s1 + $0x10] ss:$8 sps:$4 sm:$0xff]   ;;  %v311_v15 = vld [vmem:[%s422_s1 + $0x4] ss:$8 sps:$4 sm:$0xff]  }
   0x6   :  { %v313_v16 = vld [vmem:[%s422_s1] ss:$8 sps:$4 sm:$0xff]   ;;  %v37_v19 = vld [vmem:[%s423_s0 + $0x10] sm:$0xff]  ;;  %v38_v20 = vld [vmem:[%s423_s0 + $0x18] sm:$0xff]  ;;  %v220_v24 = vshrl.u32 %v219_v23, 7 }
   0x7   :  { %140 = vmatpush1.bf16.msra.mxu0 %v295_v4  ;;  %282 = vmatpush1.bf16.msra.mxu1 %v295_v4  ;;  %v35_v17 = vld [vmem:[%s423_s0] sm:$0xff]  ;;  %v36_v18 = vld [vmem:[%s423_s0 + $0x8] sm:$0xff]  ;;  %v40_v22 = vpack.c.bf16 %v38_v20, %v37_v19 }
   0x8   :  { %141 = vmatprep.subr.bf16.mxu0 %v296_v5  ;;  %275 = vmatprep.subr.bf16.mxu1 %v296_v5  ;;  %v39_v21 = vpack.c.bf16 %v36_v18, %v35_v17  ;;  %v221_v25 = vsub.s32 0, %v220_v24  ;;  %v217_v26 = vld [vmem:[%s424_s2] sm:$0x3]  ;;  %v225_v27 = vsub.s32 1, %v220_v24 }
   0xa   :  { %v222_v28 = vrot.slane %v217_v26, %v221_v25  ;;  %v226_v29 = vrot.slane %v217_v26, %v225_v27 }
   0xb   :  { %142 = vmatpush1.bf16.msra.mxu0 %v298_v6  ;;  %283 = vmatpush1.bf16.msra.mxu1 %v298_v6 }
   0xc   :  { %143 = vmatprep.subr.bf16.mxu0 %v299_v7  ;;  %276 = vmatprep.subr.bf16.mxu1 %v299_v7 }
   0xf   :  { %144 = vmatpush1.bf16.msra.mxu0 %v301_v8  ;;  %284 = vmatpush1.bf16.msra.mxu1 %v301_v8 }
  0x10   :  { %145 = vmatprep.subr.bf16.mxu0 %v302_v9  ;;  %277 = vmatprep.subr.bf16.mxu1 %v302_v9 }
  0x13   :  { %146 = vmatpush1.bf16.msra.mxu0 %v304_v10  ;;  %285 = vmatpush1.bf16.msra.mxu1 %v304_v10 }
  0x14   :  { %147 = vmatprep.subr.bf16.mxu0 %v305_v11  ;;  %278 = vmatprep.subr.bf16.mxu1 %v305_v11 }
  0x17   :  { %148 = vmatpush1.bf16.msra.mxu0 %v307_v12  ;;  %286 = vmatpush1.bf16.msra.mxu1 %v307_v12 }
  0x18   :  { %149 = vmatprep.subr.bf16.mxu0 %v308_v13  ;;  %279 = vmatprep.subr.bf16.mxu1 %v308_v13 }
  0x1b   :  { %150 = vmatpush1.bf16.msra.mxu0 %v310_v14  ;;  %287 = vmatpush1.bf16.msra.mxu1 %v310_v14 }
  0x1c   :  { %151 = vmatprep.subr.bf16.mxu0 %v311_v15  ;;  %280 = vmatprep.subr.bf16.mxu1 %v311_v15 }
  0x1f   :  { %152 = vmatpush1.bf16.msra.mxu0 %v313_v16  ;;  %288 = vmatpush1.bf16.msra.mxu1 %v313_v16 }
  0x22   :  { %170 = vmatmul.mubr.bf16.vlgmr.msra.gmra.mxu0 %v39_v21  ;;  %180 = vmatmul.mubr.bf16.vlgmr.msra.gmra.mxu1 %v40_v22 }
  0xe2   :  { %v171_v30 = vpop.f32.mrf.mxu0  ;;  %v181_v31 = vpop.f32.mrf.mxu1 }
  0xe3   :  { %v229_v32 = vadd.f32 %v222_v28, %v171_v30  ;;  %v233_v33 = vadd.f32 %v222_v28, %v181_v31 }
  0xe4   :  { %v173_v34 = vpop.f32.mrf.mxu0  ;;  %v183_v35 = vpop.f32.mrf.mxu1 }
  0xe5   :  { %v237_v36 = vmax.f32 %v229_v32, 0.0  ;;  %v241_v37 = vmax.f32 %v233_v33, 0.0  ;;  %v230_v38 = vadd.f32 %v226_v29, %v173_v34  ;;  %v234_v39 = vadd.f32 %v226_v29, %v183_v35 }
  0xe6   :  { %v175_v40 = vpop.f32.mrf.mxu0  ;;  %v185_v41 = vpop.f32.mrf.mxu1 }
  0xe7   :  { %245 = vst [vmem:[%s425_s3] sm:$0xff] %v237_v36  ;;  %249 = vst [vmem:[%s425_s3 + $0x20] sm:$0xff] %v241_v37  ;;  %v238_v42 = vmax.f32 %v230_v38, 0.0  ;;  %v242_v43 = vmax.f32 %v234_v39, 0.0  ;;  %v231_v44 = vadd.f32 %v222_v28, %v175_v40  ;;  %v235_v45 = vadd.f32 %v222_v28, %v185_v41 }
  0xe8   :  { %v177_v46 = vpop.f32.mrf.mxu0  ;;  %v187_v47 = vpop.f32.mrf.mxu1 }
  0xe9   :  { %246 = vst [vmem:[%s425_s3 + $0x8] sm:$0xff] %v238_v42  ;;  %250 = vst [vmem:[%s425_s3 + $0x28] sm:$0xff] %v242_v43  ;;  %v239_v48 = vmax.f32 %v231_v44, 0.0  ;;  %v243_v49 = vmax.f32 %v235_v45, 0.0  ;;  %v232_v50 = vadd.f32 %v226_v29, %v177_v46  ;;  %v236_v51 = vadd.f32 %v226_v29, %v187_v47 }
  0xeb   :  { %247 = vst [vmem:[%s425_s3 + $0x10] sm:$0xff] %v239_v48  ;;  %251 = vst [vmem:[%s425_s3 + $0x30] sm:$0xff] %v243_v49  ;;  %v240_v52 = vmax.f32 %v232_v50, 0.0  ;;  %v244_v53 = vmax.f32 %v236_v51, 0.0 }
  0xed   :  { %248 = vst [vmem:[%s425_s3 + $0x18] sm:$0xff] %v240_v52  ;;  %252 = vst [vmem:[%s425_s3 + $0x38] sm:$0xff] %v244_v53 }

// kernel: transformer_forward.77
= control target key start
LH: loop header
LB: loop body
LE: loop exit
PB: predicated region body
PF: predicated region fallthrough
CT: control target
= control target key end

     0   :  { %s330_s0 = inlined_call_operand.vmem [shape: f32[32,128], index: 0, kind: input, shape index: {}]   ;;  %s331_s1 = inlined_call_operand.vmem [shape: bf16[128,128], index: 1, kind: input, shape index: {}]   ;;  %s332_s2 = inlined_call_operand.vmem [shape: f32[1,128], index: 2, kind: input, shape index: {}]   ;;  %s333_s3 = inlined_call_operand.hbm [shape: f32[32,128], index: 3, kind: output, shape index: {}]  }
   0x1   :  { %v235_v0 = vld [vmem:[%s331_s1 + $0x38] sm:$0xff]   ;;  %v236_v1 = vld [vmem:[%s331_s1 + $0x30] sm:$0xff]   ;;  %v237_v2 = vld [vmem:[%s331_s1 + $0x28] sm:$0xff]  }
   0x2   :  { %212 = vmatprep.subr.bf16.mxu0 %v235_v0  ;;  %v238_v3 = vld [vmem:[%s331_s1 + $0x20] sm:$0xff]   ;;  %v29_v5 = vld [vmem:[%s330_s0 + $0x8] sm:$0xff] }
   0x3   :  { %213 = vmatpush3.bf16.msra.mxu0 %v235_v0  ;;  %v28_v4 = vld [vmem:[%s330_s0] sm:$0xff] }
   0x4   :  { %214 = vmatprep.subr.bf16.mxu0 %v236_v1  ;;  %v32_v6 = vpack.c.bf16 %v29_v5, %v28_v4 }
   0x7   :  { %215 = vmatpush3.bf16.msra.mxu0 %v236_v1 }
   0x8   :  { %216 = vmatprep.subr.bf16.mxu0 %v237_v2 }
   0x9   :  { %8 = vsyncpa [#allocation4], 0  ;;  %228 = vmatprep.mubr.bf16.mxu0 %v32_v6  ;;  %v239_v7 = vld [vmem:[%s331_s1 + $0x18] sm:$0xff]   ;;  %v240_v8 = vld [vmem:[%s331_s1 + $0x10] sm:$0xff]  }
   0xa   :  { %v241_v9 = vld [vmem:[%s331_s1 + $0x8] sm:$0xff]   ;;  %v242_v10 = vld [vmem:[%s331_s1] sm:$0xff]   ;;  %v30_v11 = vld [vmem:[%s330_s0 + $0x10] sm:$0xff]  ;;  %s265_s1 = smov [#allocation3]  }
   0xb   :  { %217 = vmatpush3.bf16.msra.mxu0 %v237_v2  ;;  %v31_v12 = vld [vmem:[%s330_s0 + $0x18] sm:$0xff]  ;;  %v201_v14 = vld [vmem:[%s332_s2] ss:$0 sm:$0xff]  ;;  %s182_s11 = sshll.u32 %s265_s1, 4  ;;  %s183_s11 = int_to_ptr.vmem [resolvable:$true] %s182_s11 }
   0xc   :  { %218 = vmatprep.subr.bf16.mxu0 %v238_v3  ;;  %v33_v13 = vpack.c.bf16 %v31_v12, %v30_v11  ;;  %s243_s0 = scalar_lea.vmem %s183_s11, 512  ;;  %p248_p1 = scmp.lt.s32.totalorder %s183_s11, %s183_s11 }
   0xd   :  { %p244_p0 = scmp.ne.s32.totalorder %s183_s11, %s243_s0  ;;  %p249_p2 = scmp.lt.s32.totalorder %s243_s0, %s243_s0 }
   0xf   :  { %219 = vmatpush3.bf16.msra.mxu0 %v238_v3  ;;  %p250_p3 = por %p249_p2, %p248_p1 }
  0x10   :  { %220 = vmatprep.subr.bf16.mxu0 %v239_v7 }
  0x11   :  { %p251_p4 = pnand %p250_p3, %p244_p0 }
  0x13   :  { %221 = vmatpush3.bf16.msra.mxu0 %v239_v7 }
  0x14   :  { %222 = vmatprep.subr.bf16.mxu0 %v240_v8 }
  0x17   :  { %223 = vmatpush3.bf16.msra.mxu0 %v240_v8 }
  0x18   :  { %224 = vmatprep.subr.bf16.mxu0 %v241_v9 }
  0x1b   :  { %225 = vmatpush3.bf16.msra.mxu0 %v241_v9 }
  0x1c   :  { %226 = vmatprep.subr.bf16.mxu0 %v242_v10 }
  0x1f   :  { %227 = vmatpush3.bf16.msra.mxu0 %v242_v10 }
  0x22   :  { %229 = vmatmul.mubr.bf16.vlgmr.msra.gmra.mxu0 %v33_v13 }
  0xe2   :  { %v230_v15 = vpop.f32.mrf.mxu0 }
  0xe3   :  { %v171_v16 = vadd.f32 %v230_v15, %v201_v14 }
  0xe4   :  { %v132_v17 = vpop.f32.mrf.mxu0 }
  0xe5   :  { %175 = vst [vmem:[#allocation3 + $0x10] sm:$0xff] %v171_v16  ;;  %v169_v18 = vadd.f32 %v201_v14, %v132_v17 }
  0xe6   :  { %v231_v19 = vpop.f32.mrf.mxu0 }
  0xe7   :  { %173 = vst [vmem:[#allocation3] sm:$0xff] %v169_v18  ;;  %v172_v20 = vadd.f32 %v231_v19, %v201_v14 }
  0xe8   :  { %v135_v21 = vpop.f32.mrf.mxu0 }
  0xe9   :  { %176 = vst [vmem:[#allocation3 + $0x18] sm:$0xff] %v172_v20  ;;  %v170_v22 = vadd.f32 %v201_v14, %v135_v21 }
  0xeb   :  { %174 = vst [vmem:[#allocation3 + $0x8] sm:$0xff] %v170_v22 }
  0xec   :  { %254 = shalt.err (!%p251_p4)
}
  0xed   :  { %s266_s2 = smov 128   ;;  %s267_s12 = smov 8  }
  0xee   :  { %188 = dma.vmem_to_hbm [thread:$0]  %s183_s11, 512, %s333_s3, [#allocation4], %s266_s2, %s266_s2, %s267_s12  }
  0xef   :  { %263 = dma.done.wait [#allocation4], 512  }
  0xf0   :  { %264 = vsyncadd [#allocation4], 4294966784 }
  0xf1   :  { %192 = vsyncpa [#allocation4], 1 }

// kernel: transformer_forward.58
= control target key start
LH: loop header
LB: loop body
LE: loop exit
PB: predicated region body
PF: predicated region fallthrough
CT: control target
= control target key end

     0   :  { %v306_v1 = vmov 0   ;;  %v219_v23 = vlaneseq  ;;  %s414_s1 = inlined_call_operand.vmem [shape: bf16[128,256], index: 1, kind: input, shape index: {}]   ;;  %s415_s0 = inlined_call_operand.vmem [shape: f32[32,128], index: 0, kind: input, shape index: {}]   ;;  %s416_s2 = inlined_call_operand.vmem [shape: f32[1,256], index: 2, kind: input, shape index: {}]   ;;  %s417_s3 = inlined_call_operand.vmem [shape: f32[32,256], index: 3, kind: output, shape index: {}]  }
   0x1   :  { %v282_v0 = vld [vmem:[%s414_s1 + $0x74] ss:$8 sps:$4 sm:$0xff]   ;;  %169 = vmatprep.mubr.bf16.mxu0 %v306_v1  ;;  %179 = vmatprep.mubr.bf16.mxu1 %v306_v1  ;;  %v284_v2 = vld [vmem:[%s414_s1 + $0x70] ss:$8 sps:$4 sm:$0xff]   ;;  %v285_v3 = vld [vmem:[%s414_s1 + $0x64] ss:$8 sps:$4 sm:$0xff]  }
   0x2   :  { %137 = vmatprep.subr.bf16.mxu0 %v282_v0  ;;  %265 = vmatprep.subr.bf16.mxu1 %v282_v0  ;;  %v287_v4 = vld [vmem:[%s414_s1 + $0x60] ss:$8 sps:$4 sm:$0xff]   ;;  %v288_v5 = vld [vmem:[%s414_s1 + $0x54] ss:$8 sps:$4 sm:$0xff]   ;;  %v290_v6 = vld [vmem:[%s414_s1 + $0x50] ss:$8 sps:$4 sm:$0xff]  }
   0x3   :  { %138 = vmatpush1.bf16.msra.mxu0 %v284_v2  ;;  %273 = vmatpush1.bf16.msra.mxu1 %v284_v2  ;;  %v291_v7 = vld [vmem:[%s414_s1 + $0x44] ss:$8 sps:$4 sm:$0xff]   ;;  %v293_v8 = vld [vmem:[%s414_s1 + $0x40] ss:$8 sps:$4 sm:$0xff]   ;;  %v294_v9 = vld [vmem:[%s414_s1 + $0x34] ss:$8 sps:$4 sm:$0xff]  }
   0x4   :  { %139 = vmatprep.subr.bf16.mxu0 %v285_v3  ;;  %266 = vmatprep.subr.bf16.mxu1 %v285_v3  ;;  %v296_v10 = vld [vmem:[%s414_s1 + $0x30] ss:$8 sps:$4 sm:$0xff]   ;;  %v297_v11 = vld [vmem:[%s414_s1 + $0x24] ss:$8 sps:$4 sm:$0xff]   ;;  %v299_v12 = vld [vmem:[%s414_s1 + $0x20] ss:$8 sps:$4 sm:$0xff]  }
   0x5   :  { %v300_v13 = vld [vmem:[%s414_s1 + $0x14] ss:$8 sps:$4 sm:$0xff]   ;;  %v302_v14 = vld [vmem:[%s414_s1 + $0x10] ss:$8 sps:$4 sm:$0xff]   ;;  %v303_v15 = vld [vmem:[%s414_s1 + $0x4] ss:$8 sps:$4 sm:$0xff]  }
   0x6   :  { %v305_v16 = vld [vmem:[%s414_s1] ss:$8 sps:$4 sm:$0xff]   ;;  %v37_v19 = vld [vmem:[%s415_s0 + $0x10] sm:$0xff]  ;;  %v38_v20 = vld [vmem:[%s415_s0 + $0x18] sm:$0xff]  ;;  %v220_v24 = vshrl.u32 %v219_v23, 7 }
   0x7   :  { %140 = vmatpush1.bf16.msra.mxu0 %v287_v4  ;;  %274 = vmatpush1.bf16.msra.mxu1 %v287_v4  ;;  %v35_v17 = vld [vmem:[%s415_s0] sm:$0xff]  ;;  %v36_v18 = vld [vmem:[%s415_s0 + $0x8] sm:$0xff]  ;;  %v40_v22 = vpack.c.bf16 %v38_v20, %v37_v19 }
   0x8   :  { %141 = vmatprep.subr.bf16.mxu0 %v288_v5  ;;  %267 = vmatprep.subr.bf16.mxu1 %v288_v5  ;;  %v39_v21 = vpack.c.bf16 %v36_v18, %v35_v17  ;;  %v221_v25 = vsub.s32 0, %v220_v24  ;;  %v217_v26 = vld [vmem:[%s416_s2] sm:$0x3]  ;;  %v225_v27 = vsub.s32 1, %v220_v24 }
   0xa   :  { %v222_v28 = vrot.slane %v217_v26, %v221_v25  ;;  %v226_v29 = vrot.slane %v217_v26, %v225_v27 }
   0xb   :  { %142 = vmatpush1.bf16.msra.mxu0 %v290_v6  ;;  %275 = vmatpush1.bf16.msra.mxu1 %v290_v6 }
   0xc   :  { %143 = vmatprep.subr.bf16.mxu0 %v291_v7  ;;  %268 = vmatprep.subr.bf16.mxu1 %v291_v7 }
   0xf   :  { %144 = vmatpush1.bf16.msra.mxu0 %v293_v8  ;;  %276 = vmatpush1.bf16.msra.mxu1 %v293_v8 }
  0x10   :  { %145 = vmatprep.subr.bf16.mxu0 %v294_v9  ;;  %269 = vmatprep.subr.bf16.mxu1 %v294_v9 }
  0x13   :  { %146 = vmatpush1.bf16.msra.mxu0 %v296_v10  ;;  %277 = vmatpush1.bf16.msra.mxu1 %v296_v10 }
  0x14   :  { %147 = vmatprep.subr.bf16.mxu0 %v297_v11  ;;  %270 = vmatprep.subr.bf16.mxu1 %v297_v11 }
  0x17   :  { %148 = vmatpush1.bf16.msra.mxu0 %v299_v12  ;;  %278 = vmatpush1.bf16.msra.mxu1 %v299_v12 }
  0x18   :  { %149 = vmatprep.subr.bf16.mxu0 %v300_v13  ;;  %271 = vmatprep.subr.bf16.mxu1 %v300_v13 }
  0x1b   :  { %150 = vmatpush1.bf16.msra.mxu0 %v302_v14  ;;  %279 = vmatpush1.bf16.msra.mxu1 %v302_v14 }
  0x1c   :  { %151 = vmatprep.subr.bf16.mxu0 %v303_v15  ;;  %272 = vmatprep.subr.bf16.mxu1 %v303_v15 }
  0x1f   :  { %152 = vmatpush1.bf16.msra.mxu0 %v305_v16  ;;  %280 = vmatpush1.bf16.msra.mxu1 %v305_v16 }
  0x22   :  { %170 = vmatmul.mubr.bf16.vlgmr.msra.gmra.mxu0 %v39_v21  ;;  %180 = vmatmul.mubr.bf16.vlgmr.msra.gmra.mxu1 %v40_v22 }
  0xe2   :  { %v171_v30 = vpop.f32.mrf.mxu0  ;;  %v181_v31 = vpop.f32.mrf.mxu1 }
  0xe3   :  { %v229_v32 = vadd.f32 %v222_v28, %v171_v30  ;;  %v233_v33 = vadd.f32 %v222_v28, %v181_v31 }
  0xe4   :  { %v173_v34 = vpop.f32.mrf.mxu0  ;;  %v183_v35 = vpop.f32.mrf.mxu1 }
  0xe5   :  { %237 = vst [vmem:[%s417_s3] sm:$0xff] %v229_v32  ;;  %241 = vst [vmem:[%s417_s3 + $0x20] sm:$0xff] %v233_v33  ;;  %v230_v36 = vadd.f32 %v226_v29, %v173_v34  ;;  %v234_v37 = vadd.f32 %v226_v29, %v183_v35 }
  0xe6   :  { %v175_v38 = vpop.f32.mrf.mxu0  ;;  %v185_v39 = vpop.f32.mrf.mxu1 }
  0xe7   :  { %238 = vst [vmem:[%s417_s3 + $0x8] sm:$0xff] %v230_v36  ;;  %242 = vst [vmem:[%s417_s3 + $0x28] sm:$0xff] %v234_v37  ;;  %v231_v40 = vadd.f32 %v222_v28, %v175_v38  ;;  %v235_v41 = vadd.f32 %v222_v28, %v185_v39 }
  0xe8   :  { %v177_v42 = vpop.f32.mrf.mxu0  ;;  %v187_v43 = vpop.f32.mrf.mxu1 }
  0xe9   :  { %239 = vst [vmem:[%s417_s3 + $0x10] sm:$0xff] %v231_v40  ;;  %243 = vst [vmem:[%s417_s3 + $0x30] sm:$0xff] %v235_v41  ;;  %v232_v44 = vadd.f32 %v226_v29, %v177_v42  ;;  %v236_v45 = vadd.f32 %v226_v29, %v187_v43 }
  0xeb   :  { %240 = vst [vmem:[%s417_s3 + $0x18] sm:$0xff] %v232_v44  ;;  %244 = vst [vmem:[%s417_s3 + $0x38] sm:$0xff] %v236_v45 }

</bundles_post_ra>
